<compile_context>
chip_gen: v7x
topology: tpu7x:2x2x1
jax: 0.10.0
libtpu: 0.0.40
codegen_flags: <defaults>
</compile_context>

<pallas_src>
import functools

import jax
import jax.numpy as jnp
from jax.experimental import pallas as pl
from jax.experimental.pallas import tpu as pltpu


# ----------------------------- fused Pallas kernel ---------------------------

def _backbone_kernel(frame_ref, band_ref, convb_ref, projw_ref, projb_ref,
                     mask_ref, pos_ref, o_ref, *, ep_dtype):
    """One grid step = (stream s, frame-tile i).  Whole frame per block.

    frame_ref : (tf, Hp, Wp*C)   bf16  zero-padded NHWC frames, rows flattened
    band_ref  : (3, Wp*C, W*Cf)  bf16  banded conv matrices, one per kernel row
    convb_ref : (1, W*Cf)        f32   conv bias tiled W times
    projw_ref : (W*Cf, D)        bf16  proj weight tiled W times, pre-scaled 1/HW
    projb_ref : (1, D)           f32
    mask_ref  : (tf, 1)          f32   frame-validity mask
    pos_ref   : (tf, D)          f32   precomputed PosFrontend residual
    o_ref     : (tf, D)          f32
    """
    tf, hp, wpc = frame_ref.shape
    h = hp - 2
    wcf = band_ref.shape[-1]

    # 3x3 conv as three banded MXU matmuls (one per kernel row); the dw shift
    # and w zero-padding live inside band_ref, the dh shift is a static
    # sublane slice of the VMEM frame block.
    conv = None
    for dh in range(3):
        rows = frame_ref[:, dh:dh + h, :].reshape(tf * h, wpc)       # bf16
        part = jnp.dot(rows, band_ref[dh], preferred_element_type=ep_dtype)
        conv = part if conv is None else conv + part                 # (tf*h, wcf)

    # Bias + ReLU (bf16 on v6e/v7x, f32 on v5e) then sum over output rows h.
    conv = jnp.maximum(conv + convb_ref[...].astype(ep_dtype), 0.0)
    psum = jnp.sum(conv.reshape(tf, h, wcf), axis=1)                 # (tf, wcf)

    # Mean pool over w,cf + projection fused into one matmul: projw is tiled
    # over w and pre-scaled by 1/(H*W), so K = W*Cf (lane-dense, 128).
    feat = jnp.dot(psum.astype(jnp.bfloat16), projw_ref[...],
                   preferred_element_type=jnp.float32)               # (tf, D)
    feat = (feat + projb_ref[...]) * mask_ref[...]

    @pl.when(pl.program_id(0) == 0)          # lip stream: no pos residual
    def _():
        o_ref[...] = feat.astype(o_ref.dtype)

    @pl.when(pl.program_id(0) != 0)          # hand stream: + PosFrontend
    def _():
        o_ref[...] = (feat + pos_ref[...]).astype(o_ref.dtype)


def _fused_call(frames, band, conv_b, proj_w_t, proj_b, mask2, pos_res, *,
                tf, d_model, vmem_limit, ep_dtype):
    S, BTp, Hp, WpC = frames.shape
    WCf = band.shape[-1]
    n_bt = BTp // tf

    kern = functools.partial(_backbone_kernel, ep_dtype=ep_dtype)

    return pl.pallas_call(
        kern,
        out_shape=jax.ShapeDtypeStruct((S, BTp, d_model), jnp.float32),
        grid_spec=pltpu.PrefetchScalarGridSpec(
            num_scalar_prefetch=0,
            grid=(S, n_bt),
            in_specs=[
                pl.BlockSpec((None, tf, Hp, WpC), lambda s, i: (s, i, 0, 0)),
                pl.BlockSpec((None, 3, WpC, WCf), lambda s, i: (s, 0, 0, 0)),
                pl.BlockSpec((None, 1, WCf), lambda s, i: (s, 0, 0)),
                pl.BlockSpec((None, WCf, d_model), lambda s, i: (s, 0, 0)),
                pl.BlockSpec((None, 1, d_model), lambda s, i: (s, 0, 0)),
                pl.BlockSpec((tf, 1), lambda s, i: (i, 0)),
                pl.BlockSpec((tf, d_model), lambda s, i: (i, 0)),
            ],
            out_specs=pl.BlockSpec((None, tf, d_model),
                                   lambda s, i: (s, i, 0)),
        ),
        compiler_params=pltpu.CompilerParams(
            dimension_semantics=("parallel", "parallel"),
            vmem_limit_bytes=vmem_limit,
        ),
    )(frames, band, conv_b, proj_w_t, proj_b, mask2, pos_res)


# ------------------------------ JAX glue ------------------------------------

def _round_up(x, m):
    return (x + m - 1) // m * m


def _device_kind():
    try:
        return jax.devices()[0].device_kind.lower()
    except Exception:
        return ""


def _vmem_limit_bytes(kind):
    # v7x has 64 MiB of VMEM per TensorCore; v4/v5e/v6e have 128 MiB.
    if "v7" in kind:
        return 48 * 1024 * 1024
    if "v4" in kind or "v5" in kind or "v6" in kind:
        return 100 * 1024 * 1024
    return 64 * 1024 * 1024


def _epilogue_dtype(kind):
    # bf16 VPU exists on v6e/v7x only; keep the conv epilogue f32 elsewhere.
    if "v6" in kind or "v7" in kind:
        return jnp.bfloat16
    return jnp.float32


def _pick_frame_tile(bt, hp, wpc, wcf, d, vmem_limit):
    """Largest frame tile whose (lane/sublane-PADDED) VMEM footprint fits."""
    lane_in = _round_up(wpc, 128)
    sub_in = _round_up(hp, 16)          # bf16 tile is (16, 128)
    lane_cv = _round_up(wcf, 128)
    h = hp - 2
    per_frame = (2 * sub_in * lane_in * 2        # frame block, 2 buffers, bf16
                 + 3 * h * lane_in * 2           # shifted row slices, bf16
                 + 2 * h * lane_cv * 4           # conv partials / relu (f32 worst case)
                 + 2 * 2 * d * 4                 # out + pos residual blocks, 2 buffers
                 + 2 * 128 * 4                   # mask block
                 + 1024)
    budget = max(vmem_limit // 3, 2 * 1024 * 1024)
    tf = max(16, min(512, (budget // per_frame) // 16 * 16))
    return min(tf, _round_up(bt, 16))


def _prep_stream_weights(fe, c_in, c_f, w, h, d_model):
    """Build the banded conv matrices + tiled bias / projection for one stream."""
    wp = w + 2
    wk = fe["conv_w"].reshape(3, 3, c_in, c_f).astype(jnp.float32)
    # shift[p, w, dw] = 1 iff padded column p == w + dw.
    shift = (jnp.arange(wp)[:, None, None]
             == (jnp.arange(w)[None, :, None]
                 + jnp.arange(3)[None, None, :])).astype(jnp.float32)
    band = jnp.einsum("pwv,hvcf->hpcwf", shift, wk)        # (3, Wp, C, W, Cf)
    band = band.reshape(3, wp * c_in, w * c_f)             # rows p*C+c, cols w*Cf+cf
    bias_t = jnp.tile(fe["conv_b"].astype(jnp.float32), w).reshape(1, w * c_f)
    projw_t = jnp.tile(fe["proj_w"].astype(jnp.float32), (w, 1)) / float(h * w)
    projb = fe["proj_b"].astype(jnp.float32).reshape(1, d_model)
    return band, bias_t, projw_t, projb


def vision_backbone(src_seq, src_length, params):
    lip, hand, hand_pos = src_seq
    B, T, C, H, W = lip.shape
    BT = B * T
    Hp, Wp = H + 2, W + 2
    WpC = Wp * C
    Cf = params["front_end_lip"]["conv_w"].shape[1]
    WCf = W * Cf
    D = params["pos_end"]["w"].shape[1]

    hand_pos = hand_pos.reshape(B, T, -1)                  # .view(B, T, -1)

    if B > 1:
        mask = (jnp.arange(T)[None, :] < src_length[:, None]).astype(jnp.float32)
        mask = mask.reshape(BT)
    else:
        mask = jnp.ones((BT,), jnp.float32)                # src_mask = None

    kind = _device_kind()
    vmem_limit = _vmem_limit_bytes(kind)
    ep_dtype = _epilogue_dtype(kind)
    tf = _pick_frame_tile(BT, Hp, WpC, WCf, D, vmem_limit)
    BTp = _round_up(BT, tf)
    pad_bt = BTp - BT

    # Raw frames -> zero-padded NHWC, rows flattened to (frames, Hp, Wp*C), bf16.
    # This is the kernel's ONLY big HBM input (~1.27x raw frame bytes).
    def prep_frames(x):
        xn = jnp.transpose(x.reshape(BT, C, H, W), (0, 2, 3, 1))     # NHWC
        xp = jnp.pad(xn, ((0, pad_bt), (1, 1), (1, 1), (0, 0)))
        return xp.reshape(BTp, Hp, WpC).astype(jnp.bfloat16)

    frames = jnp.stack([prep_frames(lip), prep_frames(hand)], axis=0)  # (2,BTp,Hp,WpC)

    # PosFrontend precomputed in glue as one lane-dense f32 residual (review).
    pos_in = hand_pos.reshape(BT, -1).astype(jnp.float32)
    pos_res = jnp.maximum(pos_in @ params["pos_end"]["w"].astype(jnp.float32)
                          + params["pos_end"]["b"].astype(jnp.float32), 0.0)

    if pad_bt:
        mask = jnp.pad(mask, ((0, pad_bt),))
        pos_res = jnp.pad(pos_res, ((0, pad_bt), (0, 0)))
    mask2 = mask.reshape(BTp, 1)

    # Per-stream weights stacked on the leading (grid) axis.
    b_l, cb_l, pw_l, pb_l = _prep_stream_weights(params["front_end_lip"],
                                                 C, Cf, W, H, D)
    b_h, cb_h, pw_h, pb_h = _prep_stream_weights(params["front_end_hand"],
                                                 C, Cf, W, H, D)
    band = jnp.stack([b_l, b_h]).astype(jnp.bfloat16)        # (2, 3, WpC, WCf)
    conv_b = jnp.stack([cb_l, cb_h])                         # (2, 1, WCf) f32
    proj_w_t = jnp.stack([pw_l, pw_h]).astype(jnp.bfloat16)  # (2, WCf, D)
    proj_b = jnp.stack([pb_l, pb_h])                         # (2, 1, D) f32

    out = _fused_call(frames, band, conv_b, proj_w_t, proj_b, mask2, pos_res,
                      tf=tf, d_model=D, vmem_limit=vmem_limit,
                      ep_dtype=ep_dtype)

    lip_f = out[0, :BT].reshape(B, T, D)
    hand_f = out[1, :BT].reshape(B, T, D)                    # frontend + pos residual
    return lip_f, hand_f


# ----------------------------- pure-JAX reference ----------------------------

def _to_nhwc(x_btchw):
    B, T, C, H, W = x_btchw.shape
    return jnp.transpose(x_btchw.reshape(B * T, C, H, W), (0, 2, 3, 1))


def im2col_3x3(x_nhwc):
    """(N,H,W,C) -> (N, H*W, 9*C) patches with zero padding of 1."""
    N, H, W, C = x_nhwc.shape
    xp = jnp.pad(x_nhwc, ((0, 0), (1, 1), (1, 1), (0, 0)))
    cols = [xp[:, dh:dh + H, dw:dw + W, :] for dh in range(3) for dw in range(3)]
    patches = jnp.stack(cols, axis=-2)            # (N,H,W,9,C)
    return patches.reshape(N, H * W, 9 * C)


def vision_backbone_reference(src_seq, src_length, params):
    lip, hand, hand_pos = src_seq
    B, T = lip.shape[0], lip.shape[1]
    hand_pos = hand_pos.reshape(B, T, -1)
    if B > 1:
        mask = (jnp.arange(T)[None, :] < src_length[:, None]).astype(jnp.float32)
    else:
        mask = None

    def frontend(x, fe):
        Bx, Tx, C, H, W = x.shape
        xn = _to_nhwc(x)
        patches = im2col_3x3(xn).reshape(Bx * Tx * H * W, -1)
        conv = jnp.maximum(patches @ fe["conv_w"] + fe["conv_b"], 0.0)
        pooled = conv.reshape(Bx * Tx, H * W, -1).mean(axis=1)
        feat = pooled @ fe["proj_w"] + fe["proj_b"]
        if mask is not None:
            feat = feat * mask.reshape(Bx * Tx, 1)
        return feat.reshape(Bx, Tx, -1)

    lip_f = frontend(lip, params["front_end_lip"])
    hand_f = frontend(hand, params["front_end_hand"])
    pos = jnp.maximum(hand_pos @ params["pos_end"]["w"] + params["pos_end"]["b"],
                      0.0)
    return lip_f, hand_f + pos


# ----------------------------- parameter init --------------------------------

def init_params(key, c_in=3, c_f=8, d_model=512, d_pos_in=2):
    ks = jax.random.split(key, 10)

    def frontend_params(k1, k2, k3, k4):
        conv_w = (jax.random.normal(k1, (3, 3, c_in, c_f), jnp.float32)
                  * (1.0 / (3 * 3 * c_in) ** 0.5)).reshape(9 * c_in, c_f)
        conv_b = jax.random.normal(k2, (c_f,), jnp.float32) * 0.01
        proj_w = jax.random.normal(k3, (c_f, d_model), jnp.float32) * (1.0 / c_f ** 0.5)
        proj_b = jax.random.normal(k4, (d_model,), jnp.float32) * 0.01
        return {"conv_w": conv_w, "conv_b": conv_b,
                "proj_w": proj_w, "proj_b": proj_b}

    return {
        "front_end_lip": frontend_params(ks[0], ks[1], ks[2], ks[3]),
        "front_end_hand": frontend_params(ks[4], ks[5], ks[6], ks[7]),
        "pos_end": {
            "w": jax.random.normal(ks[8], (d_pos_in, d_model), jnp.float32)
                 * (1.0 / d_pos_in ** 0.5),
            "b": jax.random.normal(ks[9], (d_model,), jnp.float32) * 0.01,
        },
    }


# --------------------------------- main --------------------------------------

if __name__ == "__main__":
    key = jax.random.PRNGKey(0)
    kp, k_lip, k_hand, k_pos = jax.random.split(key, 4)

    B, T, C, H, W = 2, 8, 3, 16, 16
    params = init_params(kp, c_in=C)

    lip = jax.random.normal(k_lip, (B, T, C, H, W), jnp.float32)
    hand = jax.random.normal(k_hand, (B, T, C, H, W), jnp.float32)
    hand_pos = jax.random.normal(k_pos, (B, T, 2, 1), jnp.float32)  # .view -> (B,T,2)
    src_length = jnp.array([T, T - 3], dtype=jnp.int32)

    fwd = jax.jit(vision_backbone)
    lip_out, hand_out = fwd((lip, hand, hand_pos), src_length, params)
    jax.block_until_ready((lip_out, hand_out))

    assert lip_out.shape == (B, T, 512), lip_out.shape
    assert hand_out.shape == (B, T, 512), hand_out.shape

    # Loose correctness check against an f32 pure-JAX reference (kernel uses bf16
    # matmul operands, so tolerances are generous).
    lip_ref, hand_ref = vision_backbone_reference((lip, hand, hand_pos),
                                                  src_length, params)
    err = max(float(jnp.max(jnp.abs(lip_out - lip_ref))),
              float(jnp.max(jnp.abs(hand_out - hand_ref))))
    assert err < 5e-2, f"max abs error vs reference: {err}"

    print("KERNEL_OK")
</pallas_src>

<mosaic_0001>
module attributes {stable_mosaic.version = 11 : i64} {
  func.func @_backbone_kernel(%arg0: i32, %arg1: i32, %arg2: memref<1x16x18x54xbf16, #tpu.memory_space<vmem>>, %arg3: memref<1x3x54x128xbf16, #tpu.memory_space<vmem>>, %arg4: memref<1x1x128xf32, #tpu.memory_space<vmem>>, %arg5: memref<1x128x512xbf16, #tpu.memory_space<vmem>>, %arg6: memref<1x1x512xf32, #tpu.memory_space<vmem>>, %arg7: memref<16x1xf32, #tpu.memory_space<vmem>>, %arg8: memref<16x512xf32, #tpu.memory_space<vmem>>, %arg9: memref<1x16x512xf32, #tpu.memory_space<vmem>>) attributes {dimension_semantics = [#tpu.dimension_semantics<parallel>, #tpu.dimension_semantics<parallel>], iteration_bounds = array<i64: 2, 1>, scalar_prefetch = 0 : i64, scratch_operands = 0 : i64, tpu.core_type = #tpu.core_type<tc>, window_params = [{transform_indices = @transform_0, window_bounds = array<i64: 1, 16, 18, 54>}, {transform_indices = @transform_1, window_bounds = array<i64: 1, 3, 54, 128>}, {transform_indices = @transform_2, window_bounds = array<i64: 1, 1, 128>}, {transform_indices = @transform_3, window_bounds = array<i64: 1, 128, 512>}, {transform_indices = @transform_4, window_bounds = array<i64: 1, 1, 512>}, {transform_indices = @transform_5, window_bounds = array<i64: 16, 1>}, {transform_indices = @transform_6, window_bounds = array<i64: 16, 512>}, {transform_indices = @transform_7, window_bounds = array<i64: 1, 16, 512>}]} {
    %c0 = arith.constant 0 : index
    %c0_0 = arith.constant 0 : index
    %c0_1 = arith.constant 0 : index
    %c0_2 = arith.constant 0 : index
    %0 = vector.load %arg2[%c0, %c0_0, %c0_1, %c0_2] : memref<1x16x18x54xbf16, #tpu.memory_space<vmem>>, vector<1x16x16x54xbf16>
    %1 = vector.shape_cast %0 : vector<1x16x16x54xbf16> to vector<16x16x54xbf16>
    %2 = vector.shape_cast %1 : vector<16x16x54xbf16> to vector<256x54xbf16>
    %c0_3 = arith.constant 0 : index
    %c0_4 = arith.constant 0 : index
    %c0_5 = arith.constant 0 : index
    %c0_6 = arith.constant 0 : index
    %3 = vector.load %arg3[%c0_3, %c0_4, %c0_5, %c0_6] : memref<1x3x54x128xbf16, #tpu.memory_space<vmem>>, vector<1x1x54x128xbf16>
    %4 = vector.shape_cast %3 : vector<1x1x54x128xbf16> to vector<54x128xbf16>
    %cst = arith.constant dense<0.000000e+00> : vector<256x128xf32>
    %5 = tpu.matmul %2, %4, %cst {dimension_numbers = #tpu.dot_dimension_numbers<[1], [0], [0], [1], [0, 0, 1, 1], [], []>} : vector<256x54xbf16>, vector<54x128xbf16>, vector<256x128xf32> -> vector<256x128xf32>
    %c0_7 = arith.constant 0 : index
    %c0_8 = arith.constant 0 : index
    %c1 = arith.constant 1 : index
    %c0_9 = arith.constant 0 : index
    %6 = vector.load %arg2[%c0_7, %c0_8, %c1, %c0_9] : memref<1x16x18x54xbf16, #tpu.memory_space<vmem>>, vector<1x16x16x54xbf16>
    %7 = vector.shape_cast %6 : vector<1x16x16x54xbf16> to vector<16x16x54xbf16>
    %8 = vector.shape_cast %7 : vector<16x16x54xbf16> to vector<256x54xbf16>
    %c0_10 = arith.constant 0 : index
    %c1_11 = arith.constant 1 : index
    %c0_12 = arith.constant 0 : index
    %c0_13 = arith.constant 0 : index
    %9 = vector.load %arg3[%c0_10, %c1_11, %c0_12, %c0_13] : memref<1x3x54x128xbf16, #tpu.memory_space<vmem>>, vector<1x1x54x128xbf16>
    %10 = vector.shape_cast %9 : vector<1x1x54x128xbf16> to vector<54x128xbf16>
    %cst_14 = arith.constant dense<0.000000e+00> : vector<256x128xf32>
    %11 = tpu.matmul %8, %10, %cst_14 {dimension_numbers = #tpu.dot_dimension_numbers<[1], [0], [0], [1], [0, 0, 1, 1], [], []>} : vector<256x54xbf16>, vector<54x128xbf16>, vector<256x128xf32> -> vector<256x128xf32>
    %12 = arith.addf %5, %11 : vector<256x128xf32>
    %c0_15 = arith.constant 0 : index
    %c0_16 = arith.constant 0 : index
    %c2 = arith.constant 2 : index
    %c0_17 = arith.constant 0 : index
    %13 = vector.load %arg2[%c0_15, %c0_16, %c2, %c0_17] : memref<1x16x18x54xbf16, #tpu.memory_space<vmem>>, vector<1x16x16x54xbf16>
    %14 = vector.shape_cast %13 : vector<1x16x16x54xbf16> to vector<16x16x54xbf16>
    %15 = vector.shape_cast %14 : vector<16x16x54xbf16> to vector<256x54xbf16>
    %c0_18 = arith.constant 0 : index
    %c2_19 = arith.constant 2 : index
    %c0_20 = arith.constant 0 : index
    %c0_21 = arith.constant 0 : index
    %16 = vector.load %arg3[%c0_18, %c2_19, %c0_20, %c0_21] : memref<1x3x54x128xbf16, #tpu.memory_space<vmem>>, vector<1x1x54x128xbf16>
    %17 = vector.shape_cast %16 : vector<1x1x54x128xbf16> to vector<54x128xbf16>
    %cst_22 = arith.constant dense<0.000000e+00> : vector<256x128xf32>
    %18 = tpu.matmul %15, %17, %cst_22 {dimension_numbers = #tpu.dot_dimension_numbers<[1], [0], [0], [1], [0, 0, 1, 1], [], []>} : vector<256x54xbf16>, vector<54x128xbf16>, vector<256x128xf32> -> vector<256x128xf32>
    %19 = arith.addf %12, %18 : vector<256x128xf32>
    %c0_23 = arith.constant 0 : index
    %c0_24 = arith.constant 0 : index
    %c0_25 = arith.constant 0 : index
    %20 = vector.load %arg4[%c0_23, %c0_24, %c0_25] : memref<1x1x128xf32, #tpu.memory_space<vmem>>, vector<1x1x128xf32>
    %21 = vector.shape_cast %20 : vector<1x1x128xf32> to vector<1x128xf32>
    %22 = vector.broadcast %21 : vector<1x128xf32> to vector<256x128xf32>
    %23 = arith.addf %19, %22 : vector<256x128xf32>
    %cst_26 = arith.constant 0.000000e+00 : f32
    %24 = vector.broadcast %cst_26 : f32 to vector<256x128xf32>
    %25 = arith.maximumf %23, %24 : vector<256x128xf32>
    %26 = vector.shape_cast %25 : vector<256x128xf32> to vector<16x16x128xf32>
    %cst_27 = arith.constant dense<0.000000e+00> : vector<16x128xf32>
    %27 = vector.multi_reduction <add>, %26, %cst_27 [1] : vector<16x16x128xf32> to vector<16x128xf32>
    %28 = arith.truncf %27 : vector<16x128xf32> to vector<16x128xbf16>
    %c0_28 = arith.constant 0 : index
    %c0_29 = arith.constant 0 : index
    %c0_30 = arith.constant 0 : index
    %29 = vector.load %arg5[%c0_28, %c0_29, %c0_30] : memref<1x128x512xbf16, #tpu.memory_space<vmem>>, vector<1x128x512xbf16>
    %30 = vector.shape_cast %29 : vector<1x128x512xbf16> to vector<128x512xbf16>
    %cst_31 = arith.constant dense<0.000000e+00> : vector<16x512xf32>
    %31 = tpu.matmul %28, %30, %cst_31 {dimension_numbers = #tpu.dot_dimension_numbers<[1], [0], [0], [1], [0, 0, 1, 1], [], []>} : vector<16x128xbf16>, vector<128x512xbf16>, vector<16x512xf32> -> vector<16x512xf32>
    %c0_32 = arith.constant 0 : index
    %c0_33 = arith.constant 0 : index
    %c0_34 = arith.constant 0 : index
    %32 = vector.load %arg6[%c0_32, %c0_33, %c0_34] : memref<1x1x512xf32, #tpu.memory_space<vmem>>, vector<1x1x512xf32>
    %33 = vector.shape_cast %32 : vector<1x1x512xf32> to vector<1x512xf32>
    %34 = vector.broadcast %33 : vector<1x512xf32> to vector<16x512xf32>
    %35 = arith.addf %31, %34 : vector<16x512xf32>
    %c0_35 = arith.constant 0 : index
    %c0_36 = arith.constant 0 : index
    %36 = vector.load %arg7[%c0_35, %c0_36] : memref<16x1xf32, #tpu.memory_space<vmem>>, vector<16x1xf32>
    %37 = vector.broadcast %36 : vector<16x1xf32> to vector<16x512xf32>
    %38 = arith.mulf %35, %37 : vector<16x512xf32>
    %c0_i32 = arith.constant 0 : i32
    %39 = arith.cmpi eq, %arg0, %c0_i32 : i32
    %40 = arith.extui %39 : i1 to i32
    %c0_i32_37 = arith.constant 0 : i32
    %41 = arith.cmpi ne, %40, %c0_i32_37 : i32
    scf.if %41 {
      %c0_40 = arith.constant 0 : index
      %c0_41 = arith.constant 0 : index
      %c0_42 = arith.constant 0 : index
      %45 = vector.load %arg9[%c0_40, %c0_41, %c0_42] : memref<1x16x512xf32, #tpu.memory_space<vmem>>, vector<1x16x512xf32>
      %46 = vector.shape_cast %45 : vector<1x16x512xf32> to vector<16x512xf32>
      %47 = vector.shape_cast %38 : vector<16x512xf32> to vector<1x16x512xf32>
      tpu.vector_store %arg9[%c0_40, %c0_41, %c0_42], %47 {strides = array<i32>} : memref<1x16x512xf32, #tpu.memory_space<vmem>>, vector<1x16x512xf32>,
    } else {
    }
    %c0_i32_38 = arith.constant 0 : i32
    %42 = arith.cmpi ne, %arg0, %c0_i32_38 : i32
    %43 = arith.extui %42 : i1 to i32
    %c0_i32_39 = arith.constant 0 : i32
    %44 = arith.cmpi ne, %43, %c0_i32_39 : i32
    scf.if %44 {
      %c0_40 = arith.constant 0 : index
      %c0_41 = arith.constant 0 : index
      %45 = vector.load %arg8[%c0_40, %c0_41] : memref<16x512xf32, #tpu.memory_space<vmem>>, vector<16x512xf32>
      %46 = arith.addf %38, %45 : vector<16x512xf32>
      %c0_42 = arith.constant 0 : index
      %c0_43 = arith.constant 0 : index
      %c0_44 = arith.constant 0 : index
      %47 = vector.load %arg9[%c0_42, %c0_43, %c0_44] : memref<1x16x512xf32, #tpu.memory_space<vmem>>, vector<1x16x512xf32>
      %48 = vector.shape_cast %47 : vector<1x16x512xf32> to vector<16x512xf32>
      %49 = vector.shape_cast %46 : vector<16x512xf32> to vector<1x16x512xf32>
      tpu.vector_store %arg9[%c0_42, %c0_43, %c0_44], %49 {strides = array<i32>} : memref<1x16x512xf32, #tpu.memory_space<vmem>>, vector<1x16x512xf32>,
    } else {
    }
    return
  }
  func.func @transform_0(%arg0: i32, %arg1: i32) -> (i32, i32, i32, i32) {
    %c0_i32 = arith.constant 0 : i32
    %c0_i32_0 = arith.constant 0 : i32
    %c0_i32_1 = arith.constant 0 : i32
    return %arg0, %arg1, %c0_i32, %c0_i32_0 : i32, i32, i32, i32
  }
  func.func @transform_1(%arg0: i32, %arg1: i32) -> (i32, i32, i32, i32) {
    %c0_i32 = arith.constant 0 : i32
    %c0_i32_0 = arith.constant 0 : i32
    %c0_i32_1 = arith.constant 0 : i32
    %c0_i32_2 = arith.constant 0 : i32
    return %arg0, %c0_i32, %c0_i32_0, %c0_i32_1 : i32, i32, i32, i32
  }
  func.func @transform_2(%arg0: i32, %arg1: i32) -> (i32, i32, i32) {
    %c0_i32 = arith.constant 0 : i32
    %c0_i32_0 = arith.constant 0 : i32
    %c0_i32_1 = arith.constant 0 : i32
    return %arg0, %c0_i32, %c0_i32_0 : i32, i32, i32
  }
  func.func @transform_3(%arg0: i32, %arg1: i32) -> (i32, i32, i32) {
    %c0_i32 = arith.constant 0 : i32
    %c0_i32_0 = arith.constant 0 : i32
    %c0_i32_1 = arith.constant 0 : i32
    return %arg0, %c0_i32, %c0_i32_0 : i32, i32, i32
  }
  func.func @transform_4(%arg0: i32, %arg1: i32) -> (i32, i32, i32) {
    %c0_i32 = arith.constant 0 : i32
    %c0_i32_0 = arith.constant 0 : i32
    %c0_i32_1 = arith.constant 0 : i32
    return %arg0, %c0_i32, %c0_i32_0 : i32, i32, i32
  }
  func.func @transform_5(%arg0: i32, %arg1: i32) -> (i32, i32) {
    %c0_i32 = arith.constant 0 : i32
    %c0_i32_0 = arith.constant 0 : i32
    return %arg1, %c0_i32 : i32, i32
  }
  func.func @transform_6(%arg0: i32, %arg1: i32) -> (i32, i32) {
    %c0_i32 = arith.constant 0 : i32
    %c0_i32_0 = arith.constant 0 : i32
    return %arg1, %c0_i32 : i32, i32
  }
  func.func @transform_7(%arg0: i32, %arg1: i32) -> (i32, i32, i32) {
    %c0_i32 = arith.constant 0 : i32
    %c0_i32_0 = arith.constant 0 : i32
    return %arg0, %arg1, %c0_i32 : i32, i32, i32
  }
}

</mosaic_0001>

<bundles_post_ra>
// kernel: tile.23
= control target key start
LH: loop header
LB: loop body
LE: loop exit
PB: predicated region body
PF: predicated region fallthrough
CT: control target
= control target key end

     0   :  { %s28_s0 = inlined_call_operand.vmem [shape: f32[8], index: 0, kind: input, shape index: {}]   ;;  %s29_s1 = inlined_call_operand.vmem [shape: f32[16,8], index: 1, kind: output, shape index: {}]  }
   0x1   :  { %v4_v0 = vld [vmem:[%s28_s0] ss:$0 sm:$0xff] }
   0x2   :  { %5 = vst [vmem:[%s29_s1] sm:$0xff] %v4_v0  ;;  %8 = vst [vmem:[%s29_s1 + $0x8] sm:$0xff] %v4_v0 }

// kernel: tile.38
= control target key start
LH: loop header
LB: loop body
LE: loop exit
PB: predicated region body
PF: predicated region fallthrough
CT: control target
= control target key end

     0   :  { %s131_s10 = smov 120   ;;  %s132_s11 = smov 104   ;;  %vm3_vm0 = vcmask 64512   ;;  %vm9_vm1 = vcmask 1048512   ;;  %vm15_vm2 = vcmask 982912   ;;  %vm21_vm3 = vcmask 917312   ;;  %s207_s0 = inlined_call_operand.vmem [shape: f32[16,8], index: 0, kind: input, shape index: {}]   ;;  %s208_s1 = inlined_call_operand.vmem [shape: f32[1,1,128], index: 1, kind: output, shape index: {}]  }
   0x1   :  { %v101_v0 = vld [vmem:[%s207_s0 + $0xf] sm:$0x1]   ;;  %v103_v1 = vld [vmem:[%s207_s0 + $0xd] sm:$0x1]   ;;  %v102_v2 = vld [vmem:[%s207_s0 + $0xe] sm:$0x1]  }
   0x2   :  { %7 = vrot.lane.b32.xlu0 %v101_v0, %s131_s10  ;;  %19 = vrot.lane.b32.xlu1 %v103_v1, %s132_s11  ;;  %v104_v3 = vld [vmem:[%s207_s0 + $0xc] sm:$0x1]   ;;  %s133_s16 = smov 112   ;;  %s134_s17 = smov 96   ;;  %v105_v4 = vld [vmem:[%s207_s0 + $0xb] sm:$0x1]  }
   0x3   :  { %v106_v5 = vld [vmem:[%s207_s0 + $0xa] sm:$0x1]   ;;  %v2_v6 = vld [vmem:[%s207_s0] sm:$0x1]   ;;  %s135_s24 = smov 88   ;;  %s136_s25 = smov 80  }
   0x4   :  { %4 = vst.msk [vmem:[#allocation0] sm:$0x1] %vm3_vm0, %v2_v6   ;;  %v107_v7 = vld [vmem:[%s207_s0 + $0x9] sm:$0x1]   ;;  %v108_v8 = vld [vmem:[%s207_s0 + $0x8] sm:$0x1]  }
   0x5   :  { %s137_s30 = smov 72   ;;  %s138_s2 = smov 64   ;;  %v109_v9 = vld [vmem:[%s207_s0 + $0x7] sm:$0x1]   ;;  %v110_v10 = vld [vmem:[%s207_s0 + $0x6] sm:$0x1]  }
   0x6   :  { %13 = vrot.lane.b32.xlu0 %v102_v2, %s133_s16  ;;  %25 = vrot.lane.b32.xlu1 %v104_v3, %s134_s17  ;;  %s139_s7 = smov 56   ;;  %s140_s8 = smov 48   ;;  %v111_v11 = vld [vmem:[%s207_s0 + $0x5] sm:$0x1]   ;;  %v112_v12 = vld [vmem:[%s207_s0 + $0x4] sm:$0x1]  }
   0x7   :  { %s141_s13 = smov 40   ;;  %s142_s14 = smov 32   ;;  %v113_v13 = vld [vmem:[%s207_s0 + $0x3] sm:$0x1]   ;;  %v114_v14 = vld [vmem:[%s207_s0 + $0x2] sm:$0x1]  }
   0x8   :  { %s143_s19 = smov 24   ;;  %s144_s20 = smov 16   ;;  %v115_v15 = vld [vmem:[%s207_s0 + $0x1] sm:$0x1]   ;;  %vm27_vm4 = vcmask 851712   ;;  %vm33_vm5 = vcmask 786112  }
   0x9   :  { %s145_s0 = smov 8   ;;  %vm39_vm6 = vcmask 720512   ;;  %vm45_vm7 = vcmask 654912   ;;  %vm51_vm8 = vcmask 589312   ;;  %vm57_vm9 = vcmask 523712  }
   0xa   :  { %31 = vrot.lane.b32.xlu0 %v105_v4, %s135_s24  ;;  %37 = vrot.lane.b32.xlu1 %v106_v5, %s136_s25  ;;  %vm63_vm10 = vcmask 458112   ;;  %vm69_vm11 = vcmask 392512   ;;  %vm75_vm12 = vcmask 326912   ;;  %vm81_vm13 = vcmask 261312  }
   0xb   :  { %vm87_vm14 = vcmask 195712   ;;  %vm93_vm15 = vcmask 130112  }
   0xe   :  { %43 = vrot.lane.b32.xlu0 %v107_v7, %s137_s30  ;;  %49 = vrot.lane.b32.xlu1 %v108_v8, %s138_s2 }
  0x12   :  { %55 = vrot.lane.b32.xlu0 %v109_v9, %s139_s7  ;;  %61 = vrot.lane.b32.xlu1 %v110_v10, %s140_s8 }
  0x16   :  { %67 = vrot.lane.b32.xlu0 %v111_v11, %s141_s13  ;;  %73 = vrot.lane.b32.xlu1 %v112_v12, %s142_s14 }
  0x1a   :  { %79 = vrot.lane.b32.xlu0 %v113_v13, %s143_s19  ;;  %85 = vrot.lane.b32.xlu1 %v114_v14, %s144_s20 }
  0x1e   :  { %91 = vrot.lane.b32.xlu0 %v115_v15, %s145_s0 }
  0x74   :  { %v8_v16 = vpop.permute.xlu0 %7   ;;  %v20_v17 = vpop.permute.xlu1 %19  }
  0x75   :  { %10 = vst.msk [vmem:[#allocation0] sm:$0x1] %vm9_vm1, %v8_v16  }
  0x78   :  { %v14_v18 = vpop.permute.xlu0 %13   ;;  %v26_v19 = vpop.permute.xlu1 %25  }
  0x79   :  { %16 = vst.msk [vmem:[#allocation0] sm:$0x1] %vm15_vm2, %v14_v18  }
  0x7a   :  { %22 = vst.msk [vmem:[#allocation0] sm:$0x1] %vm21_vm3, %v20_v17  }
  0x7b   :  { %28 = vst.msk [vmem:[#allocation0] sm:$0x1] %vm27_vm4, %v26_v19  }
  0x7c   :  { %v32_v20 = vpop.permute.xlu0 %31   ;;  %v38_v21 = vpop.permute.xlu1 %37  }
  0x7d   :  { %34 = vst.msk [vmem:[#allocation0] sm:$0x1] %vm33_vm5, %v32_v20  }
  0x7e   :  { %40 = vst.msk [vmem:[#allocation0] sm:$0x1] %vm39_vm6, %v38_v21  }
  0x80   :  { %v44_v22 = vpop.permute.xlu0 %43   ;;  %v50_v23 = vpop.permute.xlu1 %49  }
  0x81   :  { %46 = vst.msk [vmem:[#allocation0] sm:$0x1] %vm45_vm7, %v44_v22  }
  0x82   :  { %52 = vst.msk [vmem:[#allocation0] sm:$0x1] %vm51_vm8, %v50_v23  }
  0x84   :  { %v56_v24 = vpop.permute.xlu0 %55   ;;  %v62_v25 = vpop.permute.xlu1 %61  }
  0x85   :  { %58 = vst.msk [vmem:[#allocation0] sm:$0x1] %vm57_vm9, %v56_v24  }
  0x86   :  { %64 = vst.msk [vmem:[#allocation0] sm:$0x1] %vm63_vm10, %v62_v25  }
  0x88   :  { %v68_v26 = vpop.permute.xlu0 %67   ;;  %v74_v27 = vpop.permute.xlu1 %73  }
  0x89   :  { %70 = vst.msk [vmem:[#allocation0] sm:$0x1] %vm69_vm11, %v68_v26  }
  0x8a   :  { %76 = vst.msk [vmem:[#allocation0] sm:$0x1] %vm75_vm12, %v74_v27  }
  0x8c   :  { %v80_v28 = vpop.permute.xlu0 %79   ;;  %v86_v29 = vpop.permute.xlu1 %85  }
  0x8d   :  { %82 = vst.msk [vmem:[#allocation0] sm:$0x1] %vm81_vm13, %v80_v28  }
  0x8e   :  { %88 = vst.msk [vmem:[#allocation0] sm:$0x1] %vm87_vm14, %v86_v29  }
  0x90   :  { %v92_v30 = vpop.permute.xlu0 %91  }
  0x91   :  { %94 = vst.msk [vmem:[#allocation0] sm:$0x1] %vm93_vm15, %v92_v30  }
  0x98   :  { %v98_v31 = vld [vmem:[#allocation0] sm:$0x1] }
  0x99   :  { %100 = vst [vmem:[%s208_s1] sm:$0x1] %v98_v31 }

// kernel: vision_backbone.1
= control target key start
LH: loop header
LB: loop body
LE: loop exit
PB: predicated region body
PF: predicated region fallthrough
CT: control target
= control target key end

     0   :  { %s5175_s0 = inlined_call_operand.hbm [shape: bf16[2,16,18,54], index: 0, kind: input, shape index: {}]   ;;  %s5176_s1 = inlined_call_operand.hbm [shape: bf16[2,3,54,128], index: 1, kind: input, shape index: {}]   ;;  %s5177_s2 = inlined_call_operand.hbm [shape: f32[2,1,128], index: 2, kind: input, shape index: {}]   ;;  %s5178_s3 = inlined_call_operand.hbm [shape: bf16[2,128,512], index: 3, kind: input, shape index: {}]   ;;  %s5179_s4 = inlined_call_operand.hbm [shape: f32[2,1,512], index: 4, kind: input, shape index: {}]   ;;  %s5180_s5 = inlined_call_operand.hbm [shape: f32[16,1], index: 5, kind: input, shape index: {}]   ;;  %s5181_s6 = inlined_call_operand.hbm [shape: f32[16,512], index: 6, kind: input, shape index: {}]   ;;  %s5182_s7 = inlined_call_operand.hbm [shape: f32[2,16,512], index: 7, kind: output, shape index: {}]  }
   0x1   :  { %5213 = sst [smem:[#allocation32_spill]] %s5176_s1 }
   0x2   :  { %5214 = sst [smem:[#allocation33_spill]] %s5178_s3 }
   0x3   :  { %5215 = sst [smem:[#allocation34_spill]] %s5180_s5 }
   0x4   :  { %5216 = sst [smem:[#allocation35_spill]] %s5182_s7 }
   0x5   :  { %12 = vsyncpa [#allocation3], 0 }
   0x6   :  { %14 = vsyncpa [#allocation3 + $0x1], 0 }
   0x7   :  { %15 = vsyncpa [#allocation6], 0 }
   0x8   :  { %17 = vsyncpa [#allocation6 + $0x1], 0 }
   0x9   :  { %18 = vsyncpa [#allocation9], 0 }
   0xa   :  { %20 = vsyncpa [#allocation9 + $0x1], 0 }
   0xb   :  { %21 = vsyncpa [#allocation12], 0 }
   0xc   :  { %22 = vsyncpa [#allocation4], 0 }
   0xd   :  { %24 = vsyncpa [#allocation4 + $0x1], 0  ;;  %s3874_s24 = smov 0   ;;  %s3876_s25 = smov 0  }
   0xe   :  { %s3878_s26 = smov 0   ;;  %s3880_s27 = smov 0  }
   0xf   :  { %s3882_s28 = smov 0   ;;  %s3884_s29 = smov 0  }
  0x10 LB: > { %5217 = sst [smem:[#allocation20_spill]] %s3793_s24  ;;  %s3905_s30 = sadd.s32 4294967295, %s3813_s29   ;;  %s3813_s29 = sphi %s3884_s29, %s30_s29   ;;  %s3809_s28 = sphi %s3882_s28, %s5314_s28   ;;  %s3805_s27 = sphi %s3880_s27, %s5313_s27   ;;  %s3801_s26 = sphi %s3878_s26, %s5309_s26   ;;  %s3797_s25 = sphi %s3876_s25, %s5312_s25   ;;  %s3793_s24 = sphi %s3874_s24, %s5311_s24  }
  0x11   : > { %5218 = sst [smem:[#allocation21_spill]] %s3801_s26  ;;  %s2868_s8 = sadd.s32 4294967294, %s3813_s29  }
  0x12   : > { %p58_p0 = scmp.ne.s32.totalorder %s3801_s26, %s3797_s25  ;;  %p59_p1 = scmp.eq.s32.totalorder %s3813_s29, 0 }
  0x13   : > { %p64_p2 = scmp.ne.s32.totalorder %s3797_s25, %s3793_s24  ;;  %p5184_p3 = scmp.eq.s32.totalorder %s3905_s30, 0 }
  0x14   : > { %p246_p4 = scmp.eq.s32.totalorder %s3905_s30, 1  ;;  %p3916_p5 = por %p59_p1, %p58_p0 }
  0x15   : > { %p252_p6 = scmp.eq.s32.totalorder %s2868_s8, 1  ;;  %p3922_p7 = por %p5184_p3, %p64_p2 }
  0x16   : > { %p3926_p8 = por %p246_p4, %p58_p0  ;;  %p2869_p10 = scmp.ge.s32.totalorder %s3813_s29, 1 }
  0x17   : > { %s5220_s11 = scalar_select %p3922_p7, 1, 0 }
  0x18   : > { %s5221_s12 = scalar_select %p3926_p8, 1, 0 }
  0x19   : > { %p3930_p9 = por %p252_p6, %p64_p2  ;;  %p259_p11 = scmp.lt.s32.totalorder %s3813_s29, 3 }
  0x1a   : > { %5222 = sst [smem:[#allocation22_spill]] %s5221_s12  ;;  %s3815_s15 = smov [#allocation11]  }
  0x1b   : > { %s5223_s13 = scalar_select %p3930_p9, 1, 0 }
  0x1c   : > { %p3936_p12 = pnand %p2869_p10, %p259_p11  ;;  %s274_s16 = sshll.u32 %s3815_s15, 4  ;;  %s3940_s16 = int_to_ptr.vmem [resolvable:$true] %s274_s16 }
  0x1d   : > { %5224 = sst [smem:[#allocation23_spill]] %s5223_s13  ;;  %s42_s18 = sadd.s32 1, %s3809_s28 }
  0x1e   : > { %s5225_s14 = scalar_select %p3936_p12, 1, 0 }
  0x1f   : > { %p3342_p13 = pneg %p3936_p12  ;;  %s3954_s19 = sand.u32 1, %s3801_s26  }
  0x20   : > { %p3956_p4 = scmp.ge.s32.totalorder %s42_s18, 2  ;;  %s5228_s5 = sld [smem:[#allocation34_spill]] }
  0x21   : > { %p3948_p2 = pnand %p3342_p13, %p5184_p3 }
  0x23   : > { %s5226_s17 = scalar_select %p3948_p2, 1, 0 }
  0x24   : > { %p5193_p10 = pneg %p3948_p2 }
  0x26   : > { %s3513_s23 = scalar_lea.hbm %s5228_s5, 256 }
  0x27   : > { %p3514_p6 = scmp.ne.s32.totalorder %s5228_s5, %s3513_s23  ;;  %p3520_p0 = scmp.lt.u32.totalorder %s3513_s23, %s5228_s5 }
  0x29   : > { %p3516_p11 = pnand %p5193_p10, %p3514_p6 }
  0x2b   : > { %p3517_p13 = pneg %p3516_p11 }
  0x2d   : > { %p3522_p3 = pnand %p3520_p0, %p3517_p13 }
  0x2f   : > { %3525 = shalt.err (!%p3522_p3)
}
  0x30   : > { %s3526_s21 = scalar_lea.vmem %s3940_s16, 256  ;;  %p3534_p7 = scmp.lt.s32.totalorder %s3940_s16, %s3940_s16 }
  0x31   : > { %p3527_p1 = scmp.ne.s32.totalorder %s3940_s16, %s3526_s21  ;;  %p3535_p6 = scmp.lt.s32.totalorder %s3526_s21, %s3526_s21 }
  0x33   : > { %p3529_p9 = pnand %p3527_p1, %p5193_p10  ;;  %p3536_p11 = por %p3535_p6, %p3534_p7 }
  0x35   : > { %p3530_p8 = pneg %p3529_p9 }
  0x37   : > { %p3537_p12 = pnand %p3536_p11, %p3530_p8 }
  0x39   : > { %3540 = shalt.err (!%p3537_p12)
}
  0x3a   : > { %s3816_s9 = smov 128   ;;  %s3817_s13 = smov 8  }
  0x3b   : > { %3345 = dma.hbm_to_vmem [thread:$0]  (!%p3948_p2), %s5228_s5, 256, %s3940_s16, [#allocation12], %s3816_s9, %s3816_s9, %s3817_s13  }
  0x3c   : > { %s5316_s18 = smov (%p3956_p4, %s42_s18), 0  ;;  %p5230_p3 = scmp.lt.s32.totalorder %s3813_s29, 2 }
  0x3d   : > { %5229 = sst [smem:[#allocation24_spill]] %s5316_s18  ;;  %s46_s15 = ssub.s32 %s3809_s28, %s5316_s18 }
  0x3e   : > { %p3995_p7 = pnand %p5230_p3, %p3916_p5  ;;  %p49_p8 = scmp.eq.s32.totalorder %s46_s15, 0 }
  0x3f   : > { %s5192_s21 = sand.u32 1, %s3813_s29   ;;  %s3318_s24 = smul.u32 84, %s3954_s19 }
  0x40   : > { %s5231_s8 = scalar_select %p3995_p7, 1, 0 }
  0x41   : > { %s5232_s7 = sadd.s32 1, %s3801_s26  ;;  %s3319_s22 = smul.u32 1344, %s3809_s28 }
  0x42   : > { %s4006_s12 = scalar_select %p49_p8, %s3801_s26, %s5232_s7  }
  0x43   : > { %s333_s16 = scalar_lea.vmem [#allocation5], %s3318_s24  ;;  %s5234_s1 = sld [smem:[#allocation32_spill]] }
  0x44   : > { %5233 = sst [smem:[#allocation25_spill]] %s4006_s12  ;;  %s340_s20 = sshll.u32 %s333_s16, 4  ;;  %s4009_s20 = int_to_ptr.vmem [resolvable:$true] %s340_s20 }
  0x45   : > { %s4019_s15 = scalar_lea.sflag [#allocation6], %s5192_s21  ;;  %p4025_p9 = pneg %p3995_p7 }
  0x47   : > { %s5235_s24 = scalar_select %p4025_p9, 1, 0 }
  0x49   : > { %s4014_s13 = scalar_lea.hbm %s5234_s1, %s3319_s22  ;;  %s3546_s10 = scalar_lea.hbm %s5234_s1, 2688 }
  0x4a   : > { %s3541_s7 = scalar_lea.hbm %s4014_s13, 1344  ;;  %p3547_p1 = scmp.lt.u32.totalorder %s4014_s13, %s5234_s1 }
  0x4b   : > { %p3542_p5 = scmp.ne.s32.totalorder %s4014_s13, %s3541_s7  ;;  %p3548_p4 = scmp.lt.u32.totalorder %s3546_s10, %s3541_s7 }
  0x4c   : > { %p3550_p6 = scmp.lt.u32.totalorder %s3541_s7, %s4014_s13 }
  0x4d   : > { %p3544_p12 = pnand %p4025_p9, %p3542_p5  ;;  %p3549_p13 = por %p3548_p4, %p3547_p1 }
  0x4f   : > { %p3545_p0 = pneg %p3544_p12  ;;  %p3551_p11 = por %p3550_p6, %p3549_p13 }
  0x51   : > { %p3552_p3 = pnand %p3551_p11, %p3545_p0 }
  0x53   : > { %3555 = shalt.err (!%p3552_p3)
}
  0x54   : > { %s3556_s21 = scalar_lea.vmem %s4009_s20, 1344  ;;  %s3818_s22 = smov [#allocation5]  }
  0x55   : > { %p3557_p8 = scmp.ne.s32.totalorder %s4009_s20, %s3556_s21  ;;  %s3561_s16 = sshll.u32 %s3818_s22, 4  ;;  %s3562_s16 = int_to_ptr.vmem [resolvable:$false] %s3561_s16 }
  0x56   : > { %s3563_s23 = scalar_lea.vmem %s3562_s16, 2688  ;;  %p3564_p10 = scmp.lt.s32.totalorder %s4009_s20, %s3562_s16 }
  0x57   : > { %p3559_p5 = pnand %p3557_p8, %p4025_p9  ;;  %p3565_p2 = scmp.lt.s32.totalorder %s3563_s23, %s3556_s21 }
  0x59   : > { %p3560_p12 = pneg %p3559_p5  ;;  %p3566_p1 = por %p3565_p2, %p3564_p10 }
  0x5b   : > { %p3567_p4 = pnand %p3566_p1, %p3560_p12 }
  0x5d   : > { %3570 = shalt.err (!%p3567_p4)
}
  0x5e   : > { %s5198_s7 = smov 64   ;;  %s5199_s10 = smov 4  }
  0x5f   : > { %3355 = dma.hbm_to_vmem [thread:$0]  (!%p3995_p7), %s4014_s13, 1344, %s4009_s20, %s4019_s15, %s5198_s7, %s5198_s7, %s5199_s10  }
  0x60   : > { %s3066_s9 = sshll.u32 %s3809_s28, 12  ;;  %s5236_s3 = sld [smem:[#allocation33_spill]] }
  0x61   : > { %s5237_s23 = sshll.u32 %s3954_s19, 8  ;;  %s5238_s18 = sand.u32 1, %s3813_s29  }
  0x62   : > { %s371_s1 = scalar_lea.vmem [#allocation8], %s5237_s23  ;;  %s4064_s12 = scalar_lea.sflag [#allocation9], %s5238_s18 }
  0x63   : > { %s378_s5 = sshll.u32 %s371_s1, 4  ;;  %s4060_s5 = int_to_ptr.vmem [resolvable:$true] %s378_s5 }
  0x66   : > { %s4056_s16 = scalar_lea.hbm %s5236_s3, %s3066_s9  ;;  %s3576_s9 = scalar_lea.hbm %s5236_s3, 8192 }
  0x67   : > { %s3571_s26 = scalar_lea.hbm %s4056_s16, 4096  ;;  %p3577_p13 = scmp.lt.u32.totalorder %s4056_s16, %s5236_s3 }
  0x68   : > { %p3572_p2 = scmp.ne.s32.totalorder %s4056_s16, %s3571_s26  ;;  %p3578_p6 = scmp.lt.u32.totalorder %s3576_s9, %s3571_s26 }
  0x69   : > { %p3580_p3 = scmp.lt.u32.totalorder %s3571_s26, %s4056_s16 }
  0x6a   : > { %p3574_p10 = pnand %p3572_p2, %p4025_p9  ;;  %p3579_p11 = por %p3578_p6, %p3577_p13 }
  0x6c   : > { %p3575_p0 = pneg %p3574_p10  ;;  %p3581_p8 = por %p3580_p3, %p3579_p11 }
  0x6e   : > { %p3582_p5 = pnand %p3581_p8, %p3575_p0 }
  0x70   : > { %3585 = shalt.err (!%p3582_p5)
}
  0x71   : > { %s3586_s1 = scalar_lea.vmem %s4060_s5, 4096  ;;  %s3821_s18 = smov [#allocation8]  }
  0x72   : > { %p3587_p12 = scmp.ne.s32.totalorder %s4060_s5, %s3586_s1  ;;  %s3591_s23 = sshll.u32 %s3821_s18, 4  ;;  %s3592_s23 = int_to_ptr.vmem [resolvable:$false] %s3591_s23 }
  0x73   : > { %s3593_s20 = scalar_lea.vmem %s3592_s23, 8192  ;;  %p3594_p2 = scmp.lt.s32.totalorder %s4060_s5, %s3592_s23 }
  0x74   : > { %p3589_p1 = pnand %p3587_p12, %p4025_p9  ;;  %p3595_p10 = scmp.lt.s32.totalorder %s3593_s20, %s3586_s1 }
  0x76   : > { %p3590_p4 = pneg %p3589_p1  ;;  %p3596_p13 = por %p3595_p10, %p3594_p2 }
  0x78   : > { %p3597_p6 = pnand %p3596_p13, %p3590_p4 }
  0x7a   : > { %3600 = shalt.err (!%p3597_p6)
}
  0x7b   : > { %s3822_s26 = smov 256   ;;  %s3823_s13 = smov 16  }
  0x7c   : > { %3361 = dma.hbm_to_vmem [thread:$0]  (!%p3995_p7), %s4056_s16, 4096, %s4060_s5, %s4064_s12, %s3822_s26, %s3822_s26, %s3823_s13  }
  0x7d   : > { %s3824_s9 = smov [#allocation13]   ;;  %s3601_s23 = scalar_lea.hbm %s5181_s6, 1024 }
  0x7e   : > { %s291_s21 = sshll.u32 %s3824_s9, 4  ;;  %p3602_p0 = scmp.ne.s32.totalorder %s5181_s6, %s3601_s23  ;;  %s292_s21 = int_to_ptr.vmem [resolvable:$true] %s291_s21 }
  0x7f   : > { %p5239_p11 = scmp.ne.s32.totalorder %s5226_s17, 0  ;;  %p3608_p12 = scmp.lt.u32.totalorder %s3601_s23, %s5181_s6 }
  0x81   : > { %p5240_p3 = pneg %p5239_p11 }
  0x83   : > { %p3604_p8 = pnand %p3602_p0, %p5240_p3 }
  0x85   : > { %p3605_p5 = pneg %p3604_p8 }
  0x87   : > { %p3610_p1 = pnand %p3608_p12, %p3605_p5 }
  0x89   : > { %3613 = shalt.err (!%p3610_p1)
}
  0x8a   : > { %s3614_s5 = scalar_lea.vmem %s292_s21, 1024  ;;  %p5241_p2 = pmov %p5240_p3 }
  0x8b   : > { %p3615_p4 = scmp.ne.s32.totalorder %s292_s21, %s3614_s5  ;;  %p3622_p6 = scmp.lt.s32.totalorder %s292_s21, %s292_s21 }
  0x8c   : > { %p3623_p7 = scmp.lt.s32.totalorder %s3614_s5, %s3614_s5 }
  0x8d   : > { %p3617_p10 = pnand %p3615_p4, %p5241_p2 }
  0x8e   : > { %p3624_p9 = por %p3623_p7, %p3622_p6 }
  0x8f   : > { %p3618_p13 = pneg %p3617_p10 }
  0x91   : > { %p3625_p0 = pnand %p3624_p9, %p3618_p13 }
  0x93   : > { %3628 = shalt.err (!%p3625_p0)
}
  0x94   : > { %s3825_s16 = smov 512   ;;  %s3826_s7 = smov 32  }
  0x95   : > { %3348 = dma.hbm_to_vmem [thread:$0]  (!%p5239_p11), %s5181_s6, 1024, %s292_s21, [#allocation12], %s3825_s16, %s3825_s16, %s3826_s7  }
  0x96   : > { %s3316_s13 = smul.u32 192, %s3954_s19  ;;  %s2875_s22 = sshll.u32 %s3809_s28, 4 }
  0x97   : > { %s3317_s9 = smul.u32 3072, %s3809_s28  ;;  %s4121_s21 = scalar_lea.hbm %s5177_s2, %s2875_s22 }
  0x98   : > { %s309_s20 = scalar_lea.vmem [#allocation2], %s3316_s13  ;;  %s306_s16 = scalar_lea.sflag [#allocation3], %s3954_s19 }
  0x99   : > { %s4114_s1 = scalar_lea.hbm %s5175_s0, %s3317_s9  ;;  %s319_s5 = sshll.u32 %s309_s20, 4  ;;  %s4116_s5 = int_to_ptr.vmem [resolvable:$true] %s319_s5 }
  0x9a   : > { %s3629_s7 = scalar_lea.hbm %s4114_s1, 3072  ;;  %p5242_p9 = scmp.ne.s32.totalorder %s5235_s24, 0 }
  0x9b   : > { %p3630_p7 = scmp.ne.s32.totalorder %s4114_s1, %s3629_s7  ;;  %s3634_s9 = scalar_lea.hbm %s5175_s0, 6144 }
  0x9c   : > { %p3635_p8 = scmp.lt.u32.totalorder %s4114_s1, %s5175_s0  ;;  %p3636_p5 = scmp.lt.u32.totalorder %s3634_s9, %s3629_s7 }
  0x9d   : > { %p3632_p11 = pnand %p3630_p7, %p5242_p9  ;;  %p3638_p1 = scmp.lt.u32.totalorder %s3629_s7, %s4114_s1 }
  0x9e   : > { %p3637_p12 = por %p3636_p5, %p3635_p8 }
  0x9f   : > { %p3633_p3 = pneg %p3632_p11 }
  0xa0   : > { %p3639_p4 = por %p3638_p1, %p3637_p12 }
  0xa2   : > { %p3640_p2 = pnand %p3639_p4, %p3633_p3 }
  0xa4   : > { %3643 = shalt.err (!%p3640_p2)
}
  0xa5   : > { %s3644_s3 = scalar_lea.vmem %s4116_s5, 3072  ;;  %s3827_s22 = smov [#allocation2]  }
  0xa6   : > { %p3645_p10 = scmp.ne.s32.totalorder %s4116_s5, %s3644_s3  ;;  %s3649_s23 = sshll.u32 %s3827_s22, 4  ;;  %s3650_s23 = int_to_ptr.vmem [resolvable:$false] %s3649_s23 }
  0xa7   : > { %s3651_s20 = scalar_lea.vmem %s3650_s23, 6144  ;;  %p3652_p0 = scmp.lt.s32.totalorder %s4116_s5, %s3650_s23 }
  0xa8   : > { %p3647_p13 = pnand %p3645_p10, %p5242_p9  ;;  %p3653_p7 = scmp.lt.s32.totalorder %s3651_s20, %s3644_s3 }
  0xaa   : > { %p3648_p6 = pneg %p3647_p13  ;;  %p3654_p11 = por %p3653_p7, %p3652_p0 }
  0xac   : > { %p3655_p8 = pnand %p3654_p11, %p3648_p6 }
  0xae   : > { %3658 = shalt.err (!%p3655_p8)
}
  0xaf   : > { %p5243_p3 = scmp.ne.s32.totalorder %s5231_s8, 0  ;;  %s5244_s17 = smov 4  }
  0xb0   : > { %s5245_s7 = smov 64   ;;  %s353_s10 = scalar_lea.vmem [#allocation7], %s3954_s19 }
  0xb1   : > { %3352 = dma.hbm_to_vmem [thread:$0]  (!%p5243_p3), %s4114_s1, 3072, %s4116_s5, %s306_s16, %s5245_s7, %s5245_s7, %s5244_s17  }
  0xb2   : > { %s360_s26 = sshll.u32 %s353_s10, 4  ;;  %s2879_s9 = sshll.u32 %s3954_s19, 2  ;;  %s361_s26 = int_to_ptr.vmem [resolvable:$true] %s360_s26 }
  0xb3   : > { %s3659_s18 = scalar_lea.hbm %s4121_s21, 16  ;;  %s3664_s22 = scalar_lea.hbm %s5177_s2, 32 }
  0xb4   : > { %p3660_p5 = scmp.ne.s32.totalorder %s4121_s21, %s3659_s18  ;;  %p3665_p4 = scmp.lt.u32.totalorder %s4121_s21, %s5177_s2 }
  0xb5   : > { %p3666_p2 = scmp.lt.u32.totalorder %s3664_s22, %s3659_s18  ;;  %p3668_p13 = scmp.lt.u32.totalorder %s3659_s18, %s4121_s21 }
  0xb6   : > { %p3662_p12 = pnand %p3660_p5, %p5242_p9 }
  0xb7   : > { %p3667_p10 = por %p3666_p2, %p3665_p4 }
  0xb8   : > { %p3663_p1 = pneg %p3662_p12 }
  0xb9   : > { %p3669_p6 = por %p3668_p13, %p3667_p10 }
  0xbb   : > { %p3670_p0 = pnand %p3669_p6, %p3663_p1 }
  0xbd   : > { %3673 = shalt.err (!%p3670_p0)
}
  0xbe   : > { %s3674_s1 = scalar_lea.vmem %s361_s26, 16  ;;  %s3828_s5 = smov [#allocation7]  }
  0xbf   : > { %p3675_p7 = scmp.ne.s32.totalorder %s361_s26, %s3674_s1  ;;  %s3679_s16 = sshll.u32 %s3828_s5, 4  ;;  %s3680_s16 = int_to_ptr.vmem [resolvable:$false] %s3679_s16 }
  0xc0   : > { %s3681_s17 = scalar_lea.vmem %s3680_s16, 32  ;;  %p3682_p5 = scmp.lt.s32.totalorder %s361_s26, %s3680_s16 }
  0xc1   : > { %p3677_p11 = pnand %p3675_p7, %p5242_p9  ;;  %p3683_p12 = scmp.lt.s32.totalorder %s3681_s17, %s3674_s1 }
  0xc3   : > { %p3678_p8 = pneg %p3677_p11  ;;  %p3684_p3 = por %p3683_p12, %p3682_p5 }
  0xc5   : > { %p3685_p2 = pnand %p3684_p3, %p3678_p8 }
  0xc7   : > { %3688 = shalt.err (!%p3685_p2)
}
  0xc8   : > { %p5246_p4 = scmp.ne.s32.totalorder %s5231_s8, 0  ;;  %s3067_s7 = sshll.u32 %s3809_s28, 6 }
  0xc9   : > { %s392_s10 = scalar_lea.vmem [#allocation10], %s2879_s9  ;;  %s398_s22 = scalar_lea.hbm %s5179_s4, %s3067_s7 }
  0xca   : > { %3358 = dma.hbm_to_vmem [thread:$0]  (!%p5246_p4), %s4121_s21, 16, %s361_s26, %s4019_s15  }
  0xcb   : > { %s400_s18 = sshll.u32 %s392_s10, 4  ;;  %s3689_s23 = scalar_lea.hbm %s398_s22, 64  ;;  %s401_s18 = int_to_ptr.vmem [resolvable:$true] %s400_s18 }
  0xcc   : > { %p3690_p3 = scmp.ne.s32.totalorder %s398_s22, %s3689_s23  ;;  %s3694_s5 = scalar_lea.hbm %s5179_s4, 128 }
  0xcd   : > { %p3695_p13 = scmp.lt.u32.totalorder %s398_s22, %s5179_s4  ;;  %p3696_p6 = scmp.lt.u32.totalorder %s3694_s5, %s3689_s23 }
  0xce   : > { %p3692_p1 = pnand %p3690_p3, %p5242_p9  ;;  %p3698_p7 = scmp.lt.u32.totalorder %s3689_s23, %s398_s22 }
  0xcf   : > { %p3697_p0 = por %p3696_p6, %p3695_p13 }
  0xd0   : > { %p3693_p10 = pneg %p3692_p1 }
  0xd1   : > { %p3699_p11 = por %p3698_p7, %p3697_p0 }
  0xd3   : > { %p3700_p8 = pnand %p3699_p11, %p3693_p10 }
  0xd5   : > { %3703 = shalt.err (!%p3700_p8)
}
  0xd6   : > { %s3704_s19 = scalar_lea.vmem %s401_s18, 64  ;;  %s3829_s21 = smov [#allocation10]  }
  0xd7   : > { %p3705_p5 = scmp.ne.s32.totalorder %s401_s18, %s3704_s19  ;;  %s3709_s26 = sshll.u32 %s3829_s21, 4  ;;  %s3710_s26 = int_to_ptr.vmem [resolvable:$false] %s3709_s26 }
  0xd8   : > { %s3711_s9 = scalar_lea.vmem %s3710_s26, 128  ;;  %p3712_p3 = scmp.lt.s32.totalorder %s401_s18, %s3710_s26 }
  0xd9   : > { %p3707_p12 = pnand %p3705_p5, %p5242_p9  ;;  %p3713_p1 = scmp.lt.s32.totalorder %s3711_s9, %s3704_s19 }
  0xdb   : > { %p3708_p2 = pneg %p3707_p12  ;;  %p3714_p4 = por %p3713_p1, %p3712_p3 }
  0xdd   : > { %p3715_p6 = pnand %p3714_p4, %p3708_p2 }
  0xdf   : > { %3718 = shalt.err (!%p3715_p6)
}
  0xe0   : > { %p5247_p13 = scmp.ne.s32.totalorder %s5231_s8, 0  ;;  %p5248_p10 = scmp.ne.s32.totalorder %s5225_s14, 0 }
  0xe2   : > { %3364 = dma.hbm_to_vmem [thread:$0]  (!%p5247_p13), %s398_s22, 64, %s401_s18, %s4064_s12  }
  0xe3   : > { %409 = sbr.rel (%p5248_p10) target bundleno = 919 (0x397), region = 48 }
  0xea   : > { %s4192_s24 = sand.u32 1, %s3797_s25   ;;  %p5249_p9 = scmp.ne.s32.totalorder %s5220_s11, 0 }
  0xeb   : > { %s3320_s17 = smul.u32 192, %s4192_s24  ;;  %s412_s7 = scalar_lea.sflag [#allocation3], %s4192_s24 }
  0xed   : > { %s4196_s10 = scalar_lea.vmem [#allocation2], %s3320_s17 }
  0xee   : > { %3772 = dma.done.wait (%p5249_p9), %s412_s7, 3072  }
  0xef   : > { %3774 = vsyncadd (%p5249_p9), %s412_s7, 4294964224  ;;  %s420_s12 = sand.u32 1, %s3905_s30   ;;  %s3321_s14 = smul.u32 84, %s4192_s24 }
  0xf0   : > { %s421_s8 = scalar_lea.sflag [#allocation6], %s420_s12 }
  0xf1   : > { %s4204_s18 = scalar_lea.vmem [#allocation5], %s3321_s14 }
  0xf2   : > { %3776 = dma.done.wait (%p5249_p9), %s421_s8, 1360  }
  0xf3   : > { %3778 = vsyncadd (%p5249_p9), %s421_s8, 4294965936  ;;  %s2883_s13 = sshll.u32 %s4192_s24, 8  ;;  %s432_s3 = scalar_lea.vmem [#allocation7], %s4192_s24 }
  0xf4   : > { %s438_s22 = scalar_lea.sflag [#allocation9], %s420_s12  ;;  %s4212_s23 = scalar_lea.vmem [#allocation8], %s2883_s13 }
  0xf5   : > { %3780 = dma.done.wait (%p5249_p9), %s438_s22, 4160  }
  0xf6   : > { %3782 = vsyncadd (%p5249_p9), %s438_s22, 4294963136  ;;  %s2884_s20 = sshll.u32 %s4192_s24, 2  ;;  %p5250_p4 = scmp.eq.s32.totalorder %s3905_s30, 0 }
  0xf7   : > { %s4219_s1 = scalar_lea.vmem [#allocation10], %s2884_s20 }
  0xf8   : > { %3784 = dma.done.wait (%p5250_p4), [#allocation12], 1280   ;;  %p5251_p0 = pmov %p5250_p4 }
  0xf9   : > { %s2887_s5 = sshll.u32 %s4192_s24, 6  ;;  %v3437_v0 = vld [vmem:[%s4204_s18] sm:$0xff]   ;;  %v3438_v1 = vld [vmem:[%s4204_s18 + $0x8] sm:$0xff]   ;;  %v3439_v2 = vld [vmem:[%s4204_s18 + $0x10] sm:$0xff]   ;;  %vm1032_vm0 = vcmask 441344   ;;  %vm1081_vm1 = vcmask 1042432  }
  0xfa   : > { %3786 = vsyncadd (%p5251_p0), [#allocation12], 4294966016  ;;  %3169 = vmatprep.subr.bf16.mxu0 %v3437_v0  ;;  %v513_v3 = vld [vmem:[%s4196_s10] sm:$0xf]  ;;  %v4231_v4 = vld [vmem:[%s4196_s10 + $0x4] sm:$0xf] }
  0xfb   : > { %3170 = vmatpush3.bf16.msra.mxu0 %v3437_v0  ;;  %v2931_v5 = vcombine.low %v513_v3, %v4231_v4  ;;  %v3440_v6 = vld [vmem:[%s4204_s18 + $0x18] ss:$0 sps:$4 sm:$0x77]   ;;  %v3456_v8 = vld [vmem:[%s4204_s18 + $0x1c] sm:$0xff]   ;;  %v572_v10 = vshrl.u32 %v513_v3, 16  ;;  %v575_v13 = vshll.u32 %v513_v3, 16 }
  0xfc   : > { %3171 = vmatprep.subr.bf16.mxu0 %v3438_v1  ;;  %v3443_v7 = vld [vmem:[%s4204_s18 + $0x38] sm:$0xff]   ;;  %v1396_v9 = vsel %vm1081_vm1, %v3440_v6, 0  ;;  %3129 = vmatprep.subr.bf16.mxu1 %v3456_v8  ;;  %v3460_v16 = vld [vmem:[%s4204_s18 + $0x24] sm:$0xff]   ;;  %v585_v17 = vshrl.u32 %v4231_v4, 16  ;;  %v5205_v18 = vrot.slane %v4231_v4, 5  ;;  %v3461_v28 = vld [vmem:[%s4204_s18 + $0x2c] sm:$0xff]  }
  0xfd   : > { %3177 = vmatprep.mubr.msk.bf16.mxu0 %vm1032_vm0, %v2931_v5  ;;  %v515_v11 = vld [vmem:[%s4196_s10 + $0xc] sm:$0xf]  ;;  %v4241_v12 = vld [vmem:[%s4196_s10 + $0x10] sm:$0xf]  ;;  %v517_v14 = vld [vmem:[%s4196_s10 + $0x18] sm:$0xf]  ;;  %3130 = vmatpush3.bf16.msra.mxu1 %v3456_v8 }
  0xfe   : > { %v4246_v15 = vld [vmem:[%s4196_s10 + $0x1c] sm:$0xf]  ;;  %v596_v19 = vshrl.u32 %v515_v11, 16  ;;  %v599_v20 = vshll.u32 %v515_v11, 16  ;;  %v2932_v21 = vcombine.low %v515_v11, %v4241_v12  ;;  %v5204_v22 = vrot.slane %v4241_v12, 5  ;;  %v3448_v24 = vld [vmem:[%s4204_s18 + $0x40] sm:$0xff]   ;;  %3131 = vmatprep.subr.bf16.mxu1 %v3460_v16 }
  0xff   : > { %3172 = vmatpush3.bf16.msra.mxu0 %v3438_v1  ;;  %v620_v23 = vshrl.u32 %v517_v14, 16  ;;  %v4254_v25 = vrot.slane %v572_v10, 4  ;;  %v2933_v26 = vcombine.low %v517_v14, %v4246_v15  ;;  %v519_v27 = vld [vmem:[%s4196_s10 + $0x24] sm:$0xf]  ;;  %v4259_v29 = vrot.slane %v575_v13, 5  ;;  %v3453_v50 = vld [vmem:[%s4204_s18 + $0x48] sm:$0xff]  }
 0x100   : > { %3173 = vmatprep.subr.bf16.mxu0 %v3439_v2  ;;  %v609_v30 = vshrl.u32 %v4241_v12, 16  ;;  %v623_v31 = vshll.u32 %v517_v14, 16  ;;  %v644_v32 = vshrl.u32 %v519_v27, 16  ;;  %v521_v33 = vld [vmem:[%s4196_s10 + $0x30] sm:$0xf]  ;;  %v4265_v34 = vrot.slane %v5205_v18, 4 }
 0x101   : > { %v4267_v35 = vrot.slane %v596_v19, 4  ;;  %v647_v36 = vshll.u32 %v519_v27, 16  ;;  %v668_v37 = vshrl.u32 %v521_v33, 16  ;;  %3132 = vmatpush3.bf16.msra.mxu1 %v3460_v16  ;;  %v4269_v38 = vrot.slane %v599_v20, 5  ;;  %v4280_v42 = vld [vmem:[%s4196_s10 + $0x28] sm:$0xf] }
 0x102   : > { %v4274_v39 = vrot.slane %v5204_v22, 4  ;;  %v4276_v40 = vrot.slane %v620_v23, 4  ;;  %3133 = vmatprep.subr.bf16.mxu1 %v3461_v28  ;;  %v4284_v43 = vld [vmem:[%s4196_s10 + $0x34] sm:$0xf]  ;;  %v671_v44 = vshll.u32 %v521_v33, 16  ;;  %v4289_v46 = vrot.slane %v623_v31, 5 }
 0x103   : > { %3174 = vmatpush3.bf16.msra.mxu0 %v3439_v2  ;;  %v4287_v45 = vld [vmem:[%s4196_s10 + $0x3c] sm:$0xf]  ;;  %v4291_v47 = vrot.slane %v644_v32, 4  ;;  %v4296_v51 = vrot.slane %v647_v36, 5  ;;  %v4298_v52 = vrot.slane %v668_v37, 4  ;;  %v2934_v56 = vcombine.low %v519_v27, %v4280_v42  ;;  %s5099_s30 = scalar_lea.vmem [#allocation14], %s2887_s5 }
 0x104   : > { %3314 = vmatprep.subr.msk.bf16.mxu0 %vm1081_vm1, %v3440_v6  ;;  %v692_v49 = vshrl.u32 %v4287_v45, 16  ;;  %v4302_v54 = vld [vmem:[%s4196_s10 + $0x40] sm:$0xf]  ;;  %v695_v55 = vshll.u32 %v4287_v45, 16  ;;  %v2935_v57 = vcombine.low %v521_v33, %v4284_v43  ;;  %v4308_v58 = vld [vmem:[%s4196_s10 + $0x48] sm:$0xf]  ;;  %v578_v59 = vor.u32 %v4259_v29, %v4254_v25 }
 0x105   : > { %3134 = vmatpush3.bf16.msra.mxu1 %v3461_v28  ;;  %v4312_v60 = vrot.slane %v671_v44, 5  ;;  %v716_v62 = vshrl.u32 %v4308_v58, 16  ;;  %v719_v63 = vshll.u32 %v4308_v58, 16  ;;  %v4318_v0 = vld [vmem:[%s4196_s10 + $0x54] sm:$0xf]  ;;  %v2936_v29 = vcombine.low %v4287_v45, %v4302_v54  ;;  %p3059_p7 = scmp.ne.s32.totalorder %s3805_s27, 0 }
 0x106   : > { %v4320_v1 = vrot.slane %v692_v49, 4  ;;  %v740_v2 = vshrl.u32 %v4318_v0, 16  ;;  %v743_v3 = vshll.u32 %v4318_v0, 16  ;;  %v4325_v5 = vld [vmem:[%s4196_s10 + $0x60] sm:$0xf]  ;;  %v4327_v6 = vrot.slane %v695_v55, 5 }
 0x107   : > { %3176 = vmatpush3.bf16.msra.mxu0 %v1396_v9  ;;  %v764_v8 = vshrl.u32 %v4325_v5, 16  ;;  %v4336_v10 = vld [vmem:[%s4196_s10 + $0x58] sm:$0xf]  ;;  %vm568_vm2 = vsmask.f32 3328  ;;  %v4339_v11 = vrot.slane %v716_v62, 4  ;;  %v602_v44 = vor.u32 %v4269_v38, %v4267_v35 }
 0x108   : > { %3209 = vmatprep.subr.bf16.mxu0 %v3443_v7  ;;  %vm569_vm3 = vsmask.f32 7440  ;;  %v4341_v13 = vrot.slane %v719_v63, 5  ;;  %v4345_v16 = vld [vmem:[%s4196_s10 + $0x64] sm:$0xf]  ;;  %v4347_v19 = vrot.slane %v578_v59, 4 }
 0x109   : > { %v4349_v20 = vrot.slane %v740_v2, 4  ;;  %v767_v23 = vshll.u32 %v4325_v5, 16  ;;  %v4357_v25 = vrot.slane %v764_v8, 4  ;;  %v4365_v31 = vld [vmem:[%s4196_s10 + $0x70] sm:$0xf]  ;;  %v581_v33 = vshll.u32 %v4231_v4, 16  ;;  %vm4433_vm4 = vmor %vm568_vm2, %vm569_vm3 }
 0x10a   : > { %3178 = vmatmul.mubr.msk.bf16.vlgmr.msra.gmra.mrb[0].mxu0 %vm1032_vm0, %v2932_v21  ;;  %v4351_v21 = vrot.slane %v743_v3, 5  ;;  %v3459_v32 = vld [vmem:[%s4204_s18 + $0x50] ss:$0 sps:$4 sm:$0x77]   ;;  %v4372_v37 = vld [vmem:[%s4196_s10 + $0x78] sm:$0xf]  ;;  %v2939_v63 = vcombine.low %v4325_v5, %v4345_v16 }
 0x10b   : > { %3210 = vmatpush3.bf16.msra.mxu0 %v3443_v7  ;;  %3181 = vmatprep.mubr.msk.bf16.mxu0 %vm1032_vm0, %v2933_v26  ;;  %v4330_v7 = vld [vmem:[%s4196_s10 + $0x4c] sm:$0xf]  ;;  %5252 = vst [vmem:[#allocation26_spill] sm:$0xff] %v4357_v25  ;;  %v4382_v55 = vrot.slane %v767_v23, 5  ;;  %v812_v59 = vshrl.u32 %v4372_v37, 16  ;;  %v815_v62 = vshll.u32 %v4372_v37, 16 }
 0x10c   : > { %3211 = vmatprep.subr.bf16.mxu0 %v3448_v24  ;;  %v2937_v36 = vcombine.low %v4308_v58, %v4330_v7  ;;  %v4393_v58 = vld [vmem:[%s4196_s10 + $0x7c] sm:$0xf]  ;;  %v4404_v3 = vld [vmem:[%s4196_s10 + $0x84] sm:$0xf]  ;;  %v583_v8 = vrot.slane %v581_v33, 5  ;;  %v605_v5 = vshll.u32 %v4241_v12, 16 }
 0x10d   : > { %5253 = vst [vmem:[#allocation27_spill] sm:$0xff] %v4382_v55  ;;  %v4408_v23 = vld [vmem:[%s4196_s10 + $0x88] sm:$0xf]  ;;  %v4424_v26 = vrot.slane %v812_v59, 4  ;;  %v4426_v22 = vrot.slane %v815_v62, 5  ;;  %v611_v59 = vrot.slane %v609_v30, 4 }
 0x10e   : > { %v4429_v14 = vld [vmem:[%s4196_s10 + $0x8] sm:$0x1]  ;;  %v4446_v62 = vld [vmem:[%s4196_s10 + $0x90] sm:$0xf]  ;;  %v4454_v53 = vld [vmem:[%s4196_s10 + $0x94] sm:$0xf] }
 0x10f   : > { %3212 = vmatpush3.bf16.msra.mxu0 %v3448_v24  ;;  %v4355_v24 = vld [vmem:[%s4196_s10 + $0x6c] sm:$0xf]  ;;  %v860_v35 = vshrl.u32 %v4446_v62, 16  ;;  %v4462_v33 = vld [vmem:[%s4196_s10 + $0x9c] sm:$0xf]  ;;  %v863_v2 = vshll.u32 %v4446_v62, 16 }
 0x110   : > { %3213 = vmatprep.subr.bf16.mxu0 %v3453_v50  ;;  %v788_v27 = vshrl.u32 %v4355_v24, 16  ;;  %v791_v28 = vshll.u32 %v4355_v24, 16  ;;  %v603_v45 = vrot.slane %v602_v44, 4  ;;  %v607_v30 = vrot.slane %v605_v5, 5  ;;  %v4471_v48 = vld [vmem:[%s4196_s10 + $0x20] sm:$0x1] }
 0x111   : > { %vm1608_vm5 = vcmask 1046532   ;;  %v4511_v55 = vld [vmem:[%s4196_s10 + $0xa0] sm:$0xf]  ;;  %vm2328_vm7 = vcmask 1041409   ;;  %vm2330_vm8 = vcmask 1042434   ;;  %vm2332_vm9 = vcmask 1043459  }
 0x112   : > { %3182 = vmatmul.mubr.msk.bf16.gmra.mrb[4].mxu0 %vm1032_vm0, %v2934_v56  ;;  %v1848_v56 = vsel %vm1081_vm1, %v3459_v32, 0  ;;  %v4388_v38 = vrot.slane %v788_v27, 4  ;;  %v836_v27 = vshrl.u32 %v4404_v3, 16  ;;  %v612_v44 = vor.u32 %v611_v59, %v607_v30  ;;  %vm4588_vm6 = vmor %vm1081_vm1, %vm1608_vm5 }
 0x113   : > { %3185 = vmatprep.mubr.msk.bf16.mxu0 %vm1032_vm0, %v2935_v57  ;;  %3214 = vmatpush3.bf16.msra.mxu0 %v3453_v50  ;;  %v2938_v50 = vcombine.low %v4318_v0, %v4336_v10  ;;  %v4390_v57 = vrot.slane %v791_v28, 5  ;;  %v587_v0 = vrot.slane %v585_v17, 4  ;;  %v591_v28 = vshll.u32 %v4429_v14, 16 }
 0x114   : > { %3315 = vmatprep.subr.msk.bf16.mxu0 %vm1081_vm1, %v3459_v32  ;;  %5254 = vst [vmem:[#allocation28_spill] sm:$0xff] %v4388_v38  ;;  %v4451_v61 = vrot.slane %v836_v27, 4  ;;  %v4485_v38 = vrot.slane %v860_v35, 4  ;;  %v653_v59 = vshll.u32 %v4280_v42, 16  ;;  %v5259_v35 = vor.u32 %v4289_v46, %v4276_v40 }
 0x115   : > { %5255 = vst [vmem:[#allocation29_spill] sm:$0xff] %v4390_v57  ;;  %v588_v18 = vor.u32 %v587_v0, %v583_v8  ;;  %v584_v0 = vsel %vm4433_vm4, %v4347_v19, %v583_v8  ;;  %v884_v19 = vshrl.u32 %v4462_v33, 16  ;;  %v887_v8 = vshll.u32 %v4462_v33, 16 }
 0x116   : > { %v639_v57 = vshll.u32 %v4471_v48, 16  ;;  %vm2334_vm10 = vcmask 1044484   ;;  %vm2336_vm11 = vcmask 1045509   ;;  %vm2338_vm12 = vcmask 1046534  }
 0x117   : > { %3216 = vmatpush3.bf16.msra.mxu0 %v1848_v56  ;;  %v3464_v56 = vld [vmem:[%s4204_s18 + $0x34] ss:$0 sps:$4 sm:$0x77]   ;;  %v589_v27 = vrot.slane %v588_v18, 4  ;;  %v4513_v40 = vrot.slane %v887_v8, 5  ;;  %vm2340_vm13 = vcmask 1047559  }
 0x118   : > { %3313 = vmatprep.subr.msk.bf16.mxu1 %vm1081_vm1, %v3464_v56  ;;  %v1083_v9 = vsel %vm1081_vm1, %v3464_v56, 0  ;;  %v593_v56 = vrot.slane %v591_v28, 5 }
 0x119   : > { %3136 = vmatpush3.bf16.msra.mxu1 %v1083_v9  ;;  %v4483_v9 = vld [vmem:[%s4196_s10 + $0x2c] sm:$0x1] }
 0x11a   : > { %3186 = vmatmul.mubr.msk.bf16.gmra.mrb[8].mxu0 %vm1032_vm0, %v2936_v29  ;;  %v4438_v29 = vld [vmem:[%s4196_s10 + $0x14] sm:$0x1]  ;;  %v594_v18 = vsel %vm4433_vm4, %v589_v27, %v593_v56  ;;  %v4491_v27 = vrot.slane %v863_v2, 5  ;;  %v663_v25 = vshll.u32 %v4483_v9, 16  ;;  %v4503_v2 = vrot.slane %v884_v19, 4 }
 0x11b   : > { %3189 = vmatprep.mubr.msk.bf16.mxu0 %vm1032_vm0, %v2937_v36  ;;  %v839_v36 = vshll.u32 %v4404_v3, 16  ;;  %v615_v17 = vshll.u32 %v4438_v29, 16  ;;  %v2895_v28 = vcombine.low %v584_v0, %v594_v18  ;;  %v627_v0 = vrot.slane %v5259_v35, 4 }
 0x11c   : > { %v5260_v18 = vshrl.u32 %v4280_v42, 16  ;;  %5261 = vst [vmem:[#allocation30_spill] sm:$0xff] %v4503_v2  ;;  %v641_v35 = vrot.slane %v639_v57, 5  ;;  %v2943_v19 = vcombine.low %v4446_v62, %v4454_v53  ;;  %v1561_v2 = vld [vmem:[%s4196_s10 + $0x18] sm:$0xe] }
 0x11d   : > { %v4474_v49 = vrot.slane %v839_v36, 5  ;;  %v617_v5 = vrot.slane %v615_v17, 5  ;;  %v5258_v36 = vshrl.u32 %v4246_v15, 16  ;;  %3137 = vmatprep.mubr.msk.bf16.mxu1 %vm1032_vm0, %v2895_v28  ;;  %v613_v17 = vrot.slane %v612_v44, 4 }
 0x11e   : > { %v655_v44 = vrot.slane %v653_v59, 5 }
 0x11f   : > { %v635_v41 = vrot.slane %v5258_v36, 4  ;;  %v659_v36 = vrot.slane %v5260_v18, 4  ;;  %v618_v28 = vsel %vm4433_vm4, %v613_v17, %v617_v5  ;;  %v665_v5 = vrot.slane %v663_v25, 5 }
 0x120   : > { %v5264_v25 = vcombine.low %v4372_v37, %v4393_v58 }
 0x121   : > { %v660_v18 = vor.u32 %v659_v36, %v655_v44  ;;  %v4545_v36 = vld [vmem:[%s4196_s10 + $0xac] sm:$0xf] }
 0x122   : > { %3190 = vmatmul.mubr.msk.bf16.gmra.mrb[12].mxu0 %vm1032_vm0, %v2938_v50  ;;  %v629_v50 = vshll.u32 %v4246_v15, 16  ;;  %5265 = vst [vmem:[#allocation31_spill] sm:$0xff] %v4545_v36 }
 0x123   : > { %3193 = vmatprep.mubr.msk.bf16.mxu0 %vm1032_vm0, %v2939_v63  ;;  %v608_v63 = vsel %vm4433_vm4, %v603_v45, %v607_v30  ;;  %v5262_v45 = vor.u32 %v4296_v51, %v4291_v47  ;;  %v5263_v51 = vcombine.low %v4355_v24, %v4365_v31  ;;  %v661_v59 = vrot.slane %v660_v18, 4 }
 0x124   : > { %v631_v56 = vrot.slane %v629_v50, 5  ;;  %v2896_v46 = vcombine.low %v608_v63, %v618_v28  ;;  %v4536_v63 = vld [vmem:[%s4196_s10 + $0xa8] sm:$0xf]  ;;  %v1615_v47 = vrot.slane %v4429_v14, 5 }
 0x125   : > { %v651_v30 = vrot.slane %v5262_v45, 4  ;;  %v908_v37 = vshrl.u32 %v4536_v63, 16  ;;  %v5267_v45 = vshrl.u32 %v4284_v43, 16  ;;  %v2945_v14 = vcombine.low %v4536_v63, %v4545_v36 }
 0x126   : > { %v636_v50 = vor.u32 %v635_v41, %v631_v56  ;;  %3138 = vmatmul.mubr.msk.bf16.vlgmr.msra.gmra.mrb[0].mxu1 %vm1032_vm0, %v2896_v46  ;;  %v632_v41 = vsel %vm4433_vm4, %v627_v0, %v631_v56  ;;  %v4541_v0 = vld [vmem:[%s4196_s10 + $0x38] sm:$0x1]  ;;  %v677_v56 = vshll.u32 %v4284_v43, 16 }
 0x127   : > { %v656_v17 = vsel %vm4433_vm4, %v651_v30, %v655_v44  ;;  %v911_v30 = vshll.u32 %v4536_v63, 16  ;;  %v683_v46 = vrot.slane %v5267_v45, 4  ;;  %v687_v62 = vshll.u32 %v4541_v0, 16 }
 0x128   : > { %v637_v57 = vrot.slane %v636_v50, 4  ;;  %v666_v50 = vsel %vm4433_vm4, %v661_v59, %v665_v5  ;;  %v679_v18 = vrot.slane %v677_v56, 5  ;;  %v1559_v59 = vld [vmem:[%s4196_s10] sm:$0xe]  ;;  %v4576_v56 = vld [vmem:[%s4196_s10 + $0xb8] sm:$0xf]  ;;  %v5269_v5 = vor.u32 %v4327_v6, %v4320_v1 }
 0x129   : > { %v5268_v45 = vshrl.u32 %v4302_v54, 16  ;;  %v1560_v1 = vld [vmem:[%s4196_s10 + $0xc] sm:$0xe] }
 0x12a   : > { %3194 = vmatmul.mubr.msk.bf16.gmra.mrb[16].mxu0 %vm1032_vm0, %v5263_v51  ;;  %v642_v28 = vsel %vm4433_vm4, %v637_v57, %v641_v35  ;;  %v4558_v51 = vld [vmem:[%s4196_s10 + $0x44] sm:$0x1]  ;;  %v2898_v35 = vcombine.low %v656_v17, %v666_v50  ;;  %v5266_v57 = vor.u32 %v4312_v60, %v4298_v52  ;;  %v701_v17 = vshll.u32 %v4302_v54, 16 }
 0x12b   : > { %3197 = vmatprep.mubr.msk.bf16.mxu0 %vm1032_vm0, %v5264_v25  ;;  %v2897_v44 = vcombine.low %v632_v41, %v642_v28  ;;  %v4561_v25 = vld [vmem:[%s4196_s10 + $0xb4] sm:$0xf]  ;;  %v684_v52 = vor.u32 %v683_v46, %v679_v18  ;;  %v689_v60 = vrot.slane %v687_v62, 5  ;;  %v707_v50 = vrot.slane %v5268_v45, 4  ;;  %v3473_v46 = vld [vmem:[%s4212_s23 + $0x44] ss:$16 sps:$4 sm:$0xff]  }
 0x12c   : > { %v675_v8 = vrot.slane %v5266_v57, 4  ;;  %v932_v28 = vshrl.u32 %v4561_v25, 16  ;;  %v711_v57 = vshll.u32 %v4558_v51, 16  ;;  %v703_v24 = vrot.slane %v701_v17, 5  ;;  %v4603_v17 = vld [vmem:[%s4196_s10 + $0x50] sm:$0x1] }
 0x12d   : > { %3141 = vmatprep.mubr.msk.bf16.mxu1 %vm1032_vm0, %v2897_v44  ;;  %v699_v44 = vrot.slane %v5269_v5, 4  ;;  %v5272_v62 = vcombine.low %v4404_v3, %v4408_v23  ;;  %v2967_v45 = vrot.slane %v1559_v59, 9  ;;  %v685_v5 = vrot.slane %v684_v52, 4 }
 0x12e   : > { %3142 = vmatmul.mubr.msk.bf16.gmra.mrb[4].mxu1 %vm1032_vm0, %v2898_v35  ;;  %v680_v6 = vsel %vm4433_vm4, %v675_v8, %v679_v18  ;;  %v4606_v3 = vrot.slane %v908_v37, 4  ;;  %v708_v41 = vor.u32 %v707_v50, %v703_v24  ;;  %v713_v63 = vrot.slane %v711_v57, 5  ;;  %v4619_v18 = vld [vmem:[%s4196_s10 + $0x5c] sm:$0x1] }
 0x12f   : > { %v4610_v59 = vrot.slane %v911_v30, 5  ;;  %v4612_v36 = vrot.slane %v932_v28, 4  ;;  %v1622_v35 = vrot.slane %v4438_v29, 5  ;;  %v690_v8 = vsel %vm4433_vm4, %v685_v5, %v689_v60 }
 0x130   : > { %v2899_v37 = vcombine.low %v680_v6, %v690_v8  ;;  %v704_v30 = vsel %vm4433_vm4, %v699_v44, %v703_v24  ;;  %v709_v52 = vrot.slane %v708_v41, 4  ;;  %v5273_v28 = vrot.slane %v4231_v4, 5 }
 0x131   : > { %v2968_v50 = vrot.slane %v1560_v1, 9  ;;  %v725_v60 = vshll.u32 %v4330_v7, 16  ;;  %v5274_v57 = vshrl.u32 %v4330_v7, 16  ;;  %v5275_v4 = vor.u32 %v4341_v13, %v4339_v11 }
 0x132   : > { %3198 = vmatmul.mubr.msk.bf16.gmra.mrb[20].mxu0 %vm1032_vm0, %v5272_v62  ;;  %v2946_v62 = vcombine.low %v4561_v25, %v4576_v56  ;;  %v4632_v29 = vsel %vm4588_vm6, %v2967_v45, %v5273_v28  ;;  %3145 = vmatprep.mubr.msk.bf16.mxu1 %vm1032_vm0, %v2899_v37  ;;  %v735_v41 = vshll.u32 %v4603_v17, 16  ;;  %v749_v1 = vshll.u32 %v4336_v10, 16 }
 0x133   : > { %3201 = vmatprep.mubr.msk.bf16.mxu0 %vm1032_vm0, %v2943_v19  ;;  %v4624_v19 = vsel %vm4588_vm6, %v4265_v34, %v1615_v47  ;;  %v731_v5 = vrot.slane %v5274_v57, 4  ;;  %v1626_v34 = vrot.slane %v4246_v15, 5  ;;  %v714_v47 = vsel %vm4433_vm4, %v709_v52, %v713_v63 }
 0x134   : > { %v723_v24 = vrot.slane %v5275_v4, 4  ;;  %v2900_v44 = vcombine.low %v704_v30, %v714_v47  ;;  %v727_v45 = vrot.slane %v725_v60, 5  ;;  %v5276_v6 = vshrl.u32 %v4336_v10, 16  ;;  %v1562_v30 = vld [vmem:[%s4196_s10 + $0x24] sm:$0xe] }
 0x135   : > { %v4651_v15 = vsel %vm4588_vm6, %v4274_v39, %v1622_v35  ;;  %v2969_v37 = vrot.slane %v1561_v2, 9  ;;  %v1633_v63 = vrot.slane %v4280_v42, 5  ;;  %v759_v11 = vshll.u32 %v4619_v18, 16 }
 0x136   : > { %v755_v8 = vrot.slane %v5276_v6, 4  ;;  %v5277_v13 = vcombine.low %v4462_v33, %v4511_v55  ;;  %3146 = vmatmul.mubr.msk.bf16.gmra.mrb[8].mxu1 %vm1032_vm0, %v2900_v44  ;;  %v732_v52 = vor.u32 %v731_v5, %v727_v45  ;;  %v737_v28 = vrot.slane %v735_v41, 5  ;;  %v5281_v6 = vld [vmem:[#allocation26_spill] sm:$0xff] }
 0x137   : > { %v5278_v39 = vor.u32 %v4351_v21, %v4349_v20  ;;  %v751_v2 = vrot.slane %v749_v1, 5  ;;  %v2990_v42 = vcombine.low %v4632_v29, %v4624_v19  ;;  %v5279_v33 = vrot.slane %v4241_v12, 5  ;;  %v4678_v29 = vld [vmem:[%s4196_s10 + $0x68] sm:$0x1]  ;;  %v5280_v1 = vld [vmem:[#allocation27_spill] sm:$0xff] }
 0x138   : > { %v1628_v57 = vrot.slane %v1626_v34, 4  ;;  %v1629_v5 = vrot.slane %v4471_v48, 5  ;;  %v728_v47 = vsel %vm4433_vm4, %v723_v24, %v727_v45  ;;  %v733_v20 = vrot.slane %v732_v52, 4 }
 0x139   : > { %v747_v35 = vrot.slane %v5278_v39, 4  ;;  %v4671_v60 = vsel %vm4588_vm6, %v2968_v50, %v5279_v33  ;;  %v756_v21 = vor.u32 %v755_v8, %v751_v2  ;;  %v761_v4 = vrot.slane %v759_v11, 5  ;;  %v1563_v33 = vld [vmem:[%s4196_s10 + $0x30] sm:$0xe] }
 0x13a   : > { %3202 = vmatmul.mubr.msk.bf16.gmra.mrb[24].mxu0 %vm1032_vm0, %v5277_v13  ;;  %v2970_v41 = vrot.slane %v1562_v30, 9  ;;  %v1636_v19 = vrot.slane %v4483_v9, 5  ;;  %v773_v12 = vshll.u32 %v4345_v16, 16  ;;  %v4683_v50 = vsel %vm4588_vm6, %v2969_v37, %v1626_v34 }
 0x13b   : > { %3205 = vmatprep.mubr.msk.bf16.mxu0 %vm1032_vm0, %v2945_v14  ;;  %v1635_v14 = vrot.slane %v1633_v63, 4  ;;  %v738_v48 = vsel %vm4433_vm4, %v733_v20, %v737_v28  ;;  %v752_v24 = vsel %vm4433_vm4, %v747_v35, %v751_v2  ;;  %v757_v44 = vrot.slane %v756_v21, 4  ;;  %v4700_v28 = vld [vmem:[%s4196_s10 + $0x74] sm:$0x1]  ;;  %v5284_v20 = vld [vmem:[#allocation29_spill] sm:$0xff] }
 0x13c   : > { %v2901_v45 = vcombine.low %v728_v47, %v738_v48  ;;  %v5282_v9 = vor.u32 %v5280_v1, %v5281_v6  ;;  %v775_v11 = vrot.slane %v773_v12, 5  ;;  %v5283_v13 = vshrl.u32 %v4345_v16, 16  ;;  %v5285_v21 = vld [vmem:[#allocation28_spill] sm:$0xff] }
 0x13d   : > { %v1630_v34 = vsel %vm4588_vm6, %v1628_v57, %v1629_v5  ;;  %v762_v37 = vsel %vm4433_vm4, %v757_v44, %v761_v4  ;;  %v783_v52 = vshll.u32 %v4678_v29, 16  ;;  %v797_v39 = vshll.u32 %v4365_v31, 16 }
 0x13e   : > { %v771_v8 = vrot.slane %v5282_v9, 4  ;;  %v779_v30 = vrot.slane %v5283_v13, 4  ;;  %v4705_v35 = vsel %vm4588_vm6, %v2970_v41, %v1633_v63  ;;  %v4709_v2 = vsel %vm4588_vm6, %v1635_v14, %v1636_v19  ;;  %3149 = vmatprep.mubr.msk.bf16.mxu1 %vm1032_vm0, %v2901_v45 }
 0x13f   : > { %v2902_v57 = vcombine.low %v752_v24, %v762_v37  ;;  %v785_v47 = vrot.slane %v783_v52, 5  ;;  %v5286_v4 = vor.u32 %v5284_v20, %v5285_v21  ;;  %v799_v41 = vrot.slane %v797_v39, 5  ;;  %v4744_v37 = vld [vmem:[%s4196_s10 + $0x80] sm:$0x1]  ;;  %v1565_v21 = vld [vmem:[%s4196_s10 + $0x48] sm:$0xe] }
 0x140   : > { %v780_v5 = vor.u32 %v779_v30, %v775_v11  ;;  %v5287_v14 = vshrl.u32 %v4365_v31, 16  ;;  %v1640_v12 = vrot.slane %v4284_v43, 5  ;;  %v776_v48 = vsel %vm4433_vm4, %v771_v8, %v775_v11  ;;  %v1564_v8 = vld [vmem:[%s4196_s10 + $0x3c] sm:$0xe] }
 0x141   : > { %v795_v63 = vrot.slane %v5286_v4, 4  ;;  %3150 = vmatmul.mubr.msk.bf16.gmra.mrb[12].mxu1 %vm1032_vm0, %v2902_v57  ;;  %v807_v24 = vshll.u32 %v4700_v28, 16  ;;  %v5288_v44 = vshll.u32 %v4561_v25, 16  ;;  %v2991_v1 = vcombine.low %v4671_v60, %v4651_v15  ;;  %v4751_v57 = vld [vmem:[%s4196_s10 + $0x8c] sm:$0x1] }
 0x142   : > { %3206 = vmatmul.mubr.msk.bf16.gmra.mrb[28].mxu0 %vm1032_vm0, %v2946_v62  ;;  %v803_v19 = vrot.slane %v5287_v14, 4  ;;  %v781_v62 = vrot.slane %v780_v5, 4  ;;  %v2971_v6 = vrot.slane %v1563_v33, 9  ;;  %v2992_v43 = vcombine.low %v4683_v50, %v1630_v34 }
 0x143   : > { %3217 = vmatprep.mubr.msk.bf16.mxu0 %vm1032_vm0, %v2990_v42  ;;  %v4730_v45 = vrot.slane %v5288_v44, 5  ;;  %v2993_v9 = vcombine.low %v4705_v35, %v4709_v2  ;;  %v809_v13 = vrot.slane %v807_v24, 5  ;;  %v1647_v25 = vrot.slane %v4302_v54, 5 }
 0x144   : > { %v804_v42 = vor.u32 %v803_v19, %v799_v41  ;;  %v786_v11 = vsel %vm4433_vm4, %v781_v62, %v785_v47  ;;  %v800_v15 = vsel %vm4433_vm4, %v795_v63, %v799_v41  ;;  %v1642_v52 = vrot.slane %v1640_v12, 4 }
 0x145   : > { %v2903_v30 = vcombine.low %v776_v48, %v786_v11  ;;  %v1643_v50 = vrot.slane %v4541_v0, 5  ;;  %v821_v34 = vshll.u32 %v4393_v58, 16  ;;  %v5289_v39 = vshrl.u32 %v4393_v58, 16 }
 0x146   : > { %v805_v60 = vrot.slane %v804_v42, 4  ;;  %v1641_v54 = vsel %vm4588_vm6, %v2971_v6, %v1640_v12  ;;  %v2972_v5 = vrot.slane %v1564_v8, 9  ;;  %v1654_v47 = vrot.slane %v4330_v7, 5  ;;  %v1566_v6 = vld [vmem:[%s4196_s10 + $0x54] sm:$0xe] }
 0x147   : > { %v827_v33 = vrot.slane %v5289_v39, 4  ;;  %3153 = vmatprep.mubr.msk.bf16.mxu1 %vm1032_vm0, %v2903_v30  ;;  %v5290_v4 = vor.u32 %v4426_v22, %v4424_v26  ;;  %v823_v41 = vrot.slane %v821_v34, 5  ;;  %v831_v14 = vshll.u32 %v4744_v37, 16  ;;  %v4790_v39 = vld [vmem:[%s4196_s10 + $0x98] sm:$0x1] }
 0x148   : > { %v810_v20 = vsel %vm4433_vm4, %v805_v60, %v809_v13  ;;  %v1649_v19 = vrot.slane %v1647_v25, 4  ;;  %v845_v7 = vshll.u32 %v4408_v23, 16  ;;  %v5291_v12 = vshrl.u32 %v4408_v23, 16 }
 0x149   : > { %v2904_v0 = vcombine.low %v800_v15, %v810_v20  ;;  %v819_v63 = vrot.slane %v5290_v4, 4  ;;  %v855_v62 = vshll.u32 %v4751_v57, 16  ;;  %v1644_v22 = vsel %vm4588_vm6, %v1642_v52, %v1643_v50 }
 0x14a   : > { %3218 = vmatmul.mubr.msk.bf16.vlgmr.msra.gmra.mrb[0].mxu0 %vm1032_vm0, %v2991_v1  ;;  %v851_v48 = vrot.slane %v5291_v12, 4  ;;  %v1650_v26 = vrot.slane %v4558_v51, 5  ;;  %v828_v24 = vor.u32 %v827_v33, %v823_v41  ;;  %v833_v44 = vrot.slane %v831_v14, 5 }
 0x14b   : > { %3221 = vmatprep.mubr.msk.bf16.mxu0 %vm1032_vm0, %v2992_v43  ;;  %3154 = vmatmul.mubr.msk.bf16.gmra.mrb[16].mxu1 %vm1032_vm0, %v2904_v0  ;;  %v2973_v1 = vrot.slane %v1565_v21, 9  ;;  %v1661_v42 = vrot.slane %v4336_v10, 5  ;;  %v5292_v8 = vor.u32 %v4474_v49, %v4451_v61  ;;  %v847_v13 = vrot.slane %v845_v7, 5  ;;  %v1567_v0 = vld [vmem:[%s4196_s10 + $0x60] sm:$0xe] }
 0x14c   : > { %v1656_v43 = vrot.slane %v1654_v47, 4  ;;  %v1657_v30 = vrot.slane %v4603_v17, 5  ;;  %v824_v51 = vsel %vm4433_vm4, %v819_v63, %v823_v41  ;;  %v829_v15 = vrot.slane %v828_v24, 4  ;;  %v4803_v41 = vld [vmem:[%s4196_s10 + $0xa4] sm:$0x1] }
 0x14d   : > { %v843_v11 = vrot.slane %v5292_v8, 4  ;;  %v2994_v60 = vcombine.low %v1641_v54, %v1644_v22  ;;  %v1648_v52 = vsel %vm4588_vm6, %v2972_v5, %v1647_v25  ;;  %v852_v50 = vor.u32 %v851_v48, %v847_v13 }
 0x14e   : > { %v857_v10 = vrot.slane %v855_v62, 5  ;;  %v1651_v61 = vsel %vm4588_vm6, %v1649_v19, %v1650_v26  ;;  %v2974_v49 = vrot.slane %v1566_v6, 9  ;;  %v1664_v34 = vrot.slane %v4619_v18, 5 }
 0x14f   : > { %v834_v17 = vsel %vm4433_vm4, %v829_v15, %v833_v44  ;;  %v1663_v33 = vrot.slane %v1661_v42, 4  ;;  %v848_v54 = vsel %vm4433_vm4, %v843_v11, %v847_v13  ;;  %v853_v25 = vrot.slane %v852_v50, 4  ;;  %v5296_v44 = vld [vmem:[#allocation30_spill] sm:$0xff] }
 0x150   : > { %v2905_v20 = vcombine.low %v824_v51, %v834_v17  ;;  %v1655_v5 = vsel %vm4588_vm6, %v2973_v1, %v1654_v47  ;;  %v1658_v21 = vsel %vm4588_vm6, %v1656_v43, %v1657_v30  ;;  %v869_v18 = vshll.u32 %v4454_v53, 16 }
 0x151   : > { %v5293_v4 = vshrl.u32 %v4454_v53, 16  ;;  %v1668_v14 = vrot.slane %v4345_v16, 5  ;;  %v858_v47 = vsel %vm4433_vm4, %v853_v25, %v857_v10  ;;  %v5294_v19 = vor.u32 %v4491_v27, %v4485_v38 }
 0x152   : > { %3222 = vmatmul.mubr.msk.bf16.gmra.mrb[4].mxu0 %vm1032_vm0, %v2993_v9  ;;  %3157 = vmatprep.mubr.msk.bf16.mxu1 %vm1032_vm0, %v2905_v20  ;;  %v879_v12 = vshll.u32 %v4790_v39, 16  ;;  %v2906_v48 = vcombine.low %v848_v54, %v858_v47  ;;  %v871_v62 = vrot.slane %v869_v18, 5  ;;  %v893_v35 = vshll.u32 %v4511_v55, 16  ;;  %v4860_v18 = vld [vmem:[%s4196_s10 + $0xbc] sm:$0x1] }
 0x153   : > { %v875_v63 = vrot.slane %v5293_v4, 4  ;;  %v867_v7 = vrot.slane %v5294_v19, 4  ;;  %3225 = vmatprep.mubr.msk.bf16.mxu0 %vm1032_vm0, %v2994_v60  ;;  %v5295_v2 = vshrl.u32 %v4511_v55, 16  ;;  %v4823_v9 = vsel %vm4588_vm6, %v2974_v49, %v1661_v42 }
 0x154   : > { %v1665_v22 = vsel %vm4588_vm6, %v1663_v33, %v1664_v34  ;;  %v2975_v38 = vrot.slane %v1567_v0, 9  ;;  %v903_v27 = vshll.u32 %v4803_v41, 16  ;;  %3158 = vmatmul.mubr.msk.bf16.gmra.mrb[20].mxu1 %vm1032_vm0, %v2906_v48  ;;  %v881_v24 = vrot.slane %v879_v12, 5 }
 0x155   : > { %v899_v16 = vrot.slane %v5295_v2, 4  ;;  %v876_v26 = vor.u32 %v875_v63, %v871_v62  ;;  %v5297_v1 = vor.u32 %v4513_v40, %v5296_v44  ;;  %v895_v8 = vrot.slane %v893_v35, 5  ;;  %v4839_v40 = vld [vmem:[%s4196_s10 + $0xb0] sm:$0x1] }
 0x156   : > { %v2995_v11 = vcombine.low %v1648_v52, %v1651_v61  ;;  %v2996_v42 = vcombine.low %v1655_v5, %v1658_v21  ;;  %v1670_v13 = vrot.slane %v1668_v14, 4  ;;  %v1671_v43 = vrot.slane %v4678_v29, 5  ;;  %v5298_v61 = vld [vmem:[#allocation31_spill] sm:$0xff] }
 0x157   : > { %v891_v6 = vrot.slane %v5297_v1, 4  ;;  %v872_v30 = vsel %vm4433_vm4, %v867_v7, %v871_v62  ;;  %v877_v51 = vrot.slane %v876_v26, 4  ;;  %v900_v15 = vor.u32 %v899_v16, %v895_v8  ;;  %v1568_v29 = vld [vmem:[%s4196_s10 + $0x6c] sm:$0xe] }
 0x158   : > { %v905_v60 = vrot.slane %v903_v27, 5  ;;  %v2997_v50 = vcombine.low %v4823_v9, %v1665_v22  ;;  %v1669_v10 = vsel %vm4588_vm6, %v2975_v38, %v1668_v14  ;;  %v914_v52 = vor.u32 %v4610_v59, %v4606_v3  ;;  %v1569_v14 = vld [vmem:[%s4196_s10 + $0x78] sm:$0xe] }
 0x159   : > { %v917_v49 = vshll.u32 %v5298_v61, 16  ;;  %v1675_v34 = vrot.slane %v4365_v31, 5  ;;  %v882_v17 = vsel %vm4433_vm4, %v877_v51, %v881_v24  ;;  %v896_v33 = vsel %vm4433_vm4, %v891_v6, %v895_v8  ;;  %v1570_v51 = vld [vmem:[%s4196_s10 + $0x84] sm:$0xe] }
 0x15a   : > { %v901_v20 = vrot.slane %v900_v15, 4  ;;  %3226 = vmatmul.mubr.msk.bf16.gmra.mrb[8].mxu0 %vm1032_vm0, %v2995_v11  ;;  %v1672_v54 = vsel %vm4588_vm6, %v1670_v13, %v1671_v43  ;;  %v2907_v3 = vcombine.low %v872_v30, %v882_v17  ;;  %v915_v59 = vrot.slane %v914_v52, 4 }
 0x15b   : > { %v919_v25 = vrot.slane %v917_v49, 5  ;;  %3229 = vmatprep.mubr.msk.bf16.mxu0 %vm1032_vm0, %v2996_v42  ;;  %v5299_v5 = vshrl.u32 %v5298_v61, 16  ;;  %v927_v0 = vshll.u32 %v4839_v40, 16  ;;  %v938_v4 = vor.u32 %v4730_v45, %v4612_v36 }
 0x15c   : > { %v906_v31 = vsel %vm4433_vm4, %v901_v20, %v905_v60  ;;  %v2976_v63 = vrot.slane %v1568_v29, 9  ;;  %v1682_v47 = vrot.slane %v4393_v58, 5  ;;  %3161 = vmatprep.mubr.msk.bf16.mxu1 %vm1032_vm0, %v2907_v3  ;;  %v941_v7 = vshll.u32 %v4576_v56, 16 }
 0x15d   : > { %v923_v21 = vrot.slane %v5299_v5, 4  ;;  %v2908_v19 = vcombine.low %v896_v33, %v906_v31  ;;  %v2998_v12 = vcombine.low %v1669_v10, %v1672_v54  ;;  %v1678_v48 = vrot.slane %v4700_v28, 5 }
 0x15e   : > { %v929_v35 = vrot.slane %v927_v0, 5  ;;  %v939_v2 = vrot.slane %v938_v4, 4  ;;  %v943_v16 = vrot.slane %v941_v7, 5  ;;  %v5300_v36 = vshrl.u32 %v4576_v56, 16  ;;  %v1574_v7 = vld [vmem:[%s4196_s10 + $0xb4] sm:$0xe] }
 0x15f   : > { %v924_v62 = vor.u32 %v923_v21, %v919_v25  ;;  %3162 = vmatmul.mubr.msk.bf16.gmra.mrb[24].mxu1 %vm1032_vm0, %v2908_v19  ;;  %v951_v9 = vshll.u32 %v4860_v18, 16  ;;  %v1677_v58 = vrot.slane %v1675_v34, 4  ;;  %v2977_v22 = vrot.slane %v1569_v14, 9 }
 0x160   : > { %v947_v45 = vrot.slane %v5300_v36, 4  ;;  %v920_v38 = vsel %vm4433_vm4, %v915_v59, %v919_v25  ;;  %v1684_v26 = vrot.slane %v1682_v47, 4  ;;  %v1685_v28 = vrot.slane %v4744_v37, 5  ;;  %v1572_v59 = vld [vmem:[%s4196_s10 + $0x9c] sm:$0xe] }
 0x161   : > { %v925_v27 = vrot.slane %v924_v62, 4  ;;  %v953_v44 = vrot.slane %v951_v9, 5  ;;  %v944_v8 = vsel %vm4433_vm4, %v939_v2, %v943_v16  ;;  %v1676_v42 = vsel %vm4588_vm6, %v2976_v63, %v1675_v34  ;;  %v1573_v25 = vld [vmem:[%s4196_s10 + $0xa8] sm:$0xe]  ;;  %v3467_v9 = vld [vmem:[%s4212_s23 + $0x4] ss:$16 sps:$4 sm:$0xff]  }
 0x162   : > { %v948_v24 = vor.u32 %v947_v45, %v943_v16  ;;  %3230 = vmatmul.mubr.msk.bf16.gmra.mrb[12].mxu0 %vm1032_vm0, %v2997_v50  ;;  %v1679_v37 = vsel %vm4588_vm6, %v1677_v58, %v1678_v48  ;;  %v1689_v13 = vrot.slane %v4408_v23, 5  ;;  %v1683_v43 = vsel %vm4588_vm6, %v2977_v22, %v1682_v47  ;;  %v1571_v50 = vld [vmem:[%s4196_s10 + $0x90] sm:$0xe]  ;;  %v3465_v45 = vld [vmem:[%s4212_s23] ss:$16 sps:$4 sm:$0xff]   ;;  %2511 = vmatprep.subr.bf16.mxu1 %v3467_v9 }
 0x163   : > { %v930_v1 = vsel %vm4433_vm4, %v925_v27, %v929_v35  ;;  %3233 = vmatprep.mubr.msk.bf16.mxu0 %vm1032_vm0, %v2998_v12  ;;  %v1686_v30 = vsel %vm4588_vm6, %v1684_v26, %v1685_v28  ;;  %v1696_v15 = vrot.slane %v4454_v53, 5  ;;  %v2999_v52 = vcombine.low %v1676_v42, %v1679_v37  ;;  %2512 = vmatpush1.bf16.msra.mxu1 %v3465_v45  ;;  %v3470_v58 = vld [vmem:[%s4212_s23 + $0x24] ss:$16 sps:$4 sm:$0xff]   ;;  %v3471_v22 = vld [vmem:[%s4212_s23 + $0x40] ss:$16 sps:$4 sm:$0xff]  }
 0x164   : > { %v2909_v6 = vcombine.low %v920_v38, %v930_v1  ;;  %v949_v11 = vrot.slane %v948_v24, 4  ;;  %v3000_v49 = vcombine.low %v1683_v43, %v1686_v30  ;;  %v2978_v23 = vrot.slane %v1570_v51, 9  ;;  %2513 = vmatprep.subr.bf16.mxu1 %v3470_v58  ;;  %v3476_v38 = vld [vmem:[%s4212_s23 + $0x64] ss:$16 sps:$4 sm:$0xff]   ;;  %v3474_v27 = vld [vmem:[%s4212_s23 + $0x60] ss:$16 sps:$4 sm:$0xff]  }
 0x165   : > { %v1691_v29 = vrot.slane %v1689_v13, 4  ;;  %v1692_v34 = vrot.slane %v4751_v57, 5  ;;  %v2979_v17 = vrot.slane %v1571_v50, 9  ;;  %v1698_v33 = vrot.slane %v1696_v15, 4  ;;  %v3479_v26 = vld [vmem:[%s4212_s23 + $0x84] ss:$16 sps:$4 sm:$0xff]  }
 0x166   : > { %3165 = vmatprep.mubr.msk.bf16.mxu1 %vm1032_vm0, %v2909_v6  ;;  %v954_v60 = vsel %vm4433_vm4, %v949_v11, %v953_v44  ;;  %v1699_v53 = vrot.slane %v4790_v39, 5  ;;  %v1690_v32 = vsel %vm4588_vm6, %v2978_v23, %v1689_v13  ;;  %v1703_v54 = vrot.slane %v4511_v55, 5  ;;  %v3477_v28 = vld [vmem:[%s4212_s23 + $0x80] ss:$16 sps:$4 sm:$0xff]   ;;  %v3482_v24 = vld [vmem:[%s4212_s23 + $0xa4] ss:$16 sps:$4 sm:$0xff]  }
 0x167   : > { %v2910_v10 = vcombine.low %v944_v8, %v954_v60  ;;  %v1693_v20 = vsel %vm4588_vm6, %v1691_v29, %v1692_v34  ;;  %v1697_v57 = vsel %vm4588_vm6, %v2979_v17, %v1696_v15  ;;  %v1710_v39 = vrot.slane %v5298_v61, 5  ;;  %v3480_v44 = vld [vmem:[%s4212_s23 + $0xa0] ss:$16 sps:$4 sm:$0xff]   ;;  %v3485_v1 = vld [vmem:[%s4212_s23 + $0xc4] ss:$16 sps:$4 sm:$0xff]  }
 0x168   : > { %v1700_v3 = vsel %vm4588_vm6, %v1698_v33, %v1699_v53  ;;  %v3001_v31 = vcombine.low %v1690_v32, %v1693_v20  ;;  %v2980_v21 = vrot.slane %v1572_v59, 9  ;;  %v1705_v0 = vrot.slane %v1703_v54, 4  ;;  %v3483_v6 = vld [vmem:[%s4212_s23 + $0xc0] ss:$16 sps:$4 sm:$0xff]   ;;  %v3488_v8 = vld [vmem:[%s4212_s23 + $0xe4] ss:$16 sps:$4 sm:$0xff]  }
 0x169   : > { %3166 = vmatmul.mubr.msk.bf16.gmra.mrb[28].mxu1 %vm1032_vm0, %v2910_v10  ;;  %v3002_v5 = vcombine.low %v1697_v57, %v1700_v3  ;;  %v1706_v4 = vrot.slane %v4803_v41, 5  ;;  %v2981_v63 = vrot.slane %v1573_v25, 9  ;;  %v1712_v14 = vrot.slane %v1710_v39, 4  ;;  %v3486_v11 = vld [vmem:[%s4212_s23 + $0xe0] ss:$16 sps:$4 sm:$0xff]   ;;  %v2597_v53 = vld [vmem:[#allocation11] sm:$0xff] }
 0x16a   : > { %3234 = vmatmul.mubr.msk.bf16.gmra.mrb[16].mxu0 %vm1032_vm0, %v2999_v52  ;;  %v1713_v55 = vrot.slane %v4839_v40, 5  ;;  %v1704_v47 = vsel %vm4588_vm6, %v2980_v21, %v1703_v54  ;;  %v1717_v19 = vrot.slane %v4576_v56, 5  ;;  %v2982_v62 = vrot.slane %v1574_v7, 9  ;;  %v3491_v37 = vld [vmem:[%s4212_s23 + $0xc] ss:$16 sps:$4 sm:$0xff]   ;;  %v2598_v20 = vld [vmem:[#allocation11 + $0x8] sm:$0xff] }
 0x16b   : > { %3237 = vmatprep.mubr.msk.bf16.mxu0 %vm1032_vm0, %v3000_v49  ;;  %v1707_v61 = vsel %vm4588_vm6, %v1705_v0, %v1706_v4  ;;  %v1711_v41 = vsel %vm4588_vm6, %v2981_v63, %v1710_v39  ;;  %v1720_v2 = vrot.slane %v4860_v18, 5  ;;  %v3468_v18 = vld [vmem:[%s4212_s23 + $0x20] ss:$16 sps:$4 sm:$0xff]   ;;  %v3830_v42 = vmov 0   ;;  %v4973_v57 = vld [vmem:[%s432_s3] ss:$0 sm:$0xff] }
 0x16c   : > { %v1714_v40 = vsel %vm4588_vm6, %v1712_v14, %v1713_v55  ;;  %v3003_v12 = vcombine.low %v1704_v47, %v1707_v61  ;;  %v1719_v35 = vrot.slane %v1717_v19, 4  ;;  %v1718_v56 = vsel %vm4588_vm6, %v2982_v62, %v1717_v19  ;;  %2514 = vmatpush1.bf16.msra.mxu1 %v3468_v18  ;;  %2543 = vmatprep.mubr.bf16.mxu1 %v3830_v42 }
 0x16d   : > { %v3004_v48 = vcombine.low %v1711_v41, %v1714_v40  ;;  %2515 = vmatprep.subr.bf16.mxu1 %v3473_v46  ;;  %3436 = vset.pattern.permute.xlu0 %v3830_v42 }
 0x16e   : > { %v1721_v16 = vsel %vm4588_vm6, %v1719_v35, %v1720_v2  ;;  %2601 = vperm.xlu0 %3436, %v2597_v53  }
 0x16f   : > { %v3005_v36 = vcombine.low %v1718_v56, %v1721_v16 }
 0x170   : > { %2516 = vmatpush1.bf16.msra.mxu1 %v3471_v22 }
 0x171   : > { %2517 = vmatprep.subr.bf16.mxu1 %v3476_v38 }
 0x172   : > { %3238 = vmatmul.mubr.msk.bf16.gmra.mrb[20].mxu0 %vm1032_vm0, %v3001_v31  ;;  %2606 = vperm.xlu0 %3436, %v2598_v20  }
 0x173   : > { %3241 = vmatprep.mubr.msk.bf16.mxu0 %vm1032_vm0, %v3002_v5 }
 0x174   : > { %2518 = vmatpush1.bf16.msra.mxu1 %v3474_v27 }
 0x175   : > { %2519 = vmatprep.subr.bf16.mxu1 %v3479_v26 }
 0x178   : > { %2520 = vmatpush1.bf16.msra.mxu1 %v3477_v28 }
 0x179   : > { %2521 = vmatprep.subr.bf16.mxu1 %v3482_v24 }
 0x17a   : > { %3242 = vmatmul.mubr.msk.bf16.gmra.mrb[24].mxu0 %vm1032_vm0, %v3003_v12 }
 0x17b   : > { %3245 = vmatprep.mubr.msk.bf16.mxu0 %vm1032_vm0, %v3004_v48 }
 0x17c   : > { %2522 = vmatpush1.bf16.msra.mxu1 %v3480_v44 }
 0x17d   : > { %2523 = vmatprep.subr.bf16.mxu1 %v3485_v1 }
 0x180   : > { %2524 = vmatpush1.bf16.msra.mxu1 %v3483_v6 }
 0x181   : > { %2525 = vmatprep.subr.bf16.mxu1 %v3488_v8 }
 0x182   : > { %3246 = vmatmul.mubr.msk.bf16.gmra.mrb[28].mxu0 %vm1032_vm0, %v3005_v36 }
 0x184   : > { %2526 = vmatpush1.bf16.msra.mxu1 %v3486_v11 }
 0x185   : > { %2554 = vmatprep.subr.bf16.mxu1 %v3491_v37 }
 0x1f9   : > { %v3139_v13 = vpop.f32.mrb[0].mxu1 }
 0x1fa   : > { %v1119_v43 = vpop.f32.mrb[1].mxu1 }
 0x1fb   : > { %v3140_v30 = vpop.f32.mrb[2].mxu1 }
 0x1fc   : > { %v1122_v51 = vpop.f32.mrb[3].mxu1 }
 0x201   : > { %v3143_v15 = vpop.f32.mrb[4].mxu1 }
 0x202   : > { %v1135_v60 = vpop.f32.mrb[5].mxu1 }
 0x203   : > { %v3144_v50 = vpop.f32.mrb[6].mxu1 }
 0x204   : > { %v1138_v10 = vpop.f32.mrb[7].mxu1 }
 0x209   : > { %v4955_v52 = vpop.f32.mrb[8].mxu1 }
 0x20a   : > { %v4957_v49 = vpop.f32.mrb[9].mxu1 }
 0x20b   : > { %v4959_v23 = vpop.f32.mrb[10].mxu1 }
 0x20c   : > { %v4961_v29 = vpop.f32.mrb[11].mxu1 }
 0x214   : > { %v4963_v34 = vpop.f32.mrb[12].mxu1 }
 0x215   : > { %v4965_v17 = vpop.f32.mrb[13].mxu1 }
 0x216   : > { %v4967_v33 = vpop.f32.mrb[14].mxu1 }
 0x217   : > { %v4969_v32 = vpop.f32.mrb[15].mxu1 }
 0x21d   : > { %v3219_v54 = vpop.f32.mrb[0].mxu0 }
 0x21e   : > { %v3249_v3 = vadd.f32 %v3219_v54, %v3139_v13  ;;  %v1884_v59 = vpop.f32.mrb[1].mxu0  ;;  %v4975_v39 = vpop.f32.mrb[16].mxu1 }
 0x21f   : > { %v3250_v25 = vadd.f32 %v1884_v59, %v1119_v43  ;;  %v3220_v31 = vpop.f32.mrb[2].mxu0  ;;  %v4977_v5 = vpop.f32.mrb[17].mxu1 }
 0x220   : > { %v2052_v21 = vadd.f32 %v3249_v3, %v4973_v57  ;;  %v3251_v0 = vadd.f32 %v3220_v31, %v3140_v30  ;;  %v1887_v4 = vpop.f32.mrb[3].mxu0  ;;  %v4980_v63 = vpop.f32.mrb[18].mxu1 }
 0x221   : > { %v2050_v14 = vadd.f32 %v3250_v25, %v4973_v57  ;;  %v3252_v55 = vadd.f32 %v1887_v4, %v1122_v51  ;;  %v4983_v47 = vpop.f32.mrb[19].mxu1 }
 0x222   : > { %v2053_v61 = vadd.f32 %v3251_v0, %v4973_v57  ;;  %v2084_v41 = vmax.f32 %v2052_v21, 0.0 }
 0x223   : > { %v2051_v19 = vadd.f32 %v3252_v55, %v4973_v57  ;;  %v2082_v7 = vmax.f32 %v2050_v14, 0.0 }
 0x224   : > { %v2085_v40 = vmax.f32 %v2053_v61, 0.0 }
 0x225   : > { %v2083_v12 = vmax.f32 %v2051_v19, 0.0  ;;  %v3223_v48 = vpop.f32.mrb[4].mxu0 }
 0x226   : > { %v2121_v62 = vadd.f32 %v2085_v40, %v2084_v41  ;;  %v3253_v35 = vadd.f32 %v3223_v48, %v3143_v15  ;;  %v1900_v2 = vpop.f32.mrb[5].mxu0 }
 0x227   : > { %v2114_v56 = vadd.f32 %v2083_v12, %v2082_v7  ;;  %v3254_v16 = vadd.f32 %v1900_v2, %v1135_v60  ;;  %v3224_v36 = vpop.f32.mrb[6].mxu0  ;;  %v4988_v22 = vpop.f32.mrb[20].mxu1 }
 0x228   : > { %v2122_v45 = vrot.slane %v2121_v62, 4  ;;  %v2056_v9 = vadd.f32 %v3253_v35, %v4973_v57  ;;  %v3255_v18 = vadd.f32 %v3224_v36, %v3144_v50  ;;  %v1903_v58 = vpop.f32.mrb[7].mxu0  ;;  %v4991_v26 = vpop.f32.mrb[21].mxu1 }
 0x229   : > { %v2115_v46 = vrot.slane %v2114_v56, 4  ;;  %v2054_v38 = vadd.f32 %v3254_v16, %v4973_v57  ;;  %v3256_v27 = vadd.f32 %v1903_v58, %v1138_v10  ;;  %v4994_v44 = vpop.f32.mrb[22].mxu1 }
 0x22a   : > { %v2123_v28 = vadd.f32 %v2122_v45, %v2121_v62  ;;  %v2057_v24 = vadd.f32 %v3255_v18, %v4973_v57  ;;  %v4997_v8 = vpop.f32.mrb[23].mxu1  ;;  %v2088_v37 = vmax.f32 %v2056_v9, 0.0 }
 0x22b   : > { %v2116_v1 = vadd.f32 %v2115_v46, %v2114_v56  ;;  %v2055_v6 = vadd.f32 %v3256_v27, %v4973_v57  ;;  %v2086_v30 = vmax.f32 %v2054_v38, 0.0 }
 0x22c   : > { %v2124_v11 = vrot.slane %v2123_v28, 2  ;;  %v2089_v13 = vmax.f32 %v2057_v24, 0.0 }
 0x22d   : > { %v2117_v43 = vrot.slane %v2116_v1, 2  ;;  %v2087_v51 = vmax.f32 %v2055_v6, 0.0  ;;  %v3227_v15 = vpop.f32.mrb[8].mxu0 }
 0x22e   : > { %v2125_v60 = vadd.f32 %v2124_v11, %v2123_v28  ;;  %v2135_v50 = vadd.f32 %v2089_v13, %v2088_v37  ;;  %v3257_v10 = vadd.f32 %v3227_v15, %v4955_v52  ;;  %v1916_v53 = vpop.f32.mrb[9].mxu0 }
 0x22f   : > { %v2118_v20 = vadd.f32 %v2117_v43, %v2116_v1  ;;  %v2128_v54 = vadd.f32 %v2087_v51, %v2086_v30  ;;  %v3258_v3 = vadd.f32 %v1916_v53, %v4957_v49  ;;  %v3228_v59 = vpop.f32.mrb[10].mxu0 }
 0x230   : > { %v2126_v25 = vrot.slane %v2125_v60, 1  ;;  %v2136_v31 = vrot.slane %v2135_v50, 4  ;;  %v2060_v21 = vadd.f32 %v3257_v10, %v4973_v57  ;;  %v3259_v0 = vadd.f32 %v3228_v59, %v4959_v23  ;;  %v1919_v4 = vpop.f32.mrb[11].mxu0 }
 0x231   : > { %v2119_v14 = vrot.slane %v2118_v20, 1  ;;  %v2129_v55 = vrot.slane %v2128_v54, 4  ;;  %v2058_v61 = vadd.f32 %v3258_v3, %v4973_v57  ;;  %v3260_v19 = vadd.f32 %v1919_v4, %v4961_v29 }
 0x232   : > { %v5005_v52 = vpop.f32.mrb[24].mxu1  ;;  %v2127_v41 = vadd.f32 %v2126_v25, %v2125_v60  ;;  %v2137_v40 = vadd.f32 %v2136_v31, %v2135_v50  ;;  %v2061_v49 = vadd.f32 %v3259_v0, %v4973_v57  ;;  %v2092_v56 = vmax.f32 %v2060_v21, 0.0 }
 0x233   : > { %v5008_v7 = vpop.f32.mrb[25].mxu1  ;;  %v2120_v12 = vadd.f32 %v2119_v14, %v2118_v20  ;;  %v2130_v48 = vadd.f32 %v2129_v55, %v2128_v54  ;;  %v2059_v23 = vadd.f32 %v3260_v19, %v4973_v57  ;;  %v2090_v9 = vmax.f32 %v2058_v61, 0.0 }
 0x234   : > { %v5011_v62 = vpop.f32.mrb[26].mxu1  ;;  %v2227_v35 = vpack.c.bf16 %v2127_v41, %v2127_v41  ;;  %v2138_v2 = vrot.slane %v2137_v40, 2  ;;  %v2093_v16 = vmax.f32 %v2061_v49, 0.0 }
 0x235   : > { %v5013_v29 = vpop.f32.mrb[27].mxu1  ;;  %v2226_v36 = vpack.c.bf16 %v2120_v12, %v2120_v12  ;;  %v2131_v45 = vrot.slane %v2130_v48, 2  ;;  %v2091_v18 = vmax.f32 %v2059_v23, 0.0  ;;  %v3231_v58 = vpop.f32.mrb[12].mxu0 }
 0x236   : > { %v2313_v46 = vunpack.c.l.b16 %v2227_v35  ;;  %v2139_v38 = vadd.f32 %v2138_v2, %v2137_v40  ;;  %v2149_v27 = vadd.f32 %v2093_v16, %v2092_v56  ;;  %v3261_v28 = vadd.f32 %v3231_v58, %v4963_v34  ;;  %v1932_v24 = vpop.f32.mrb[13].mxu0 }
 0x237   : > { %v2312_v1 = vunpack.c.l.b16 %v2226_v36  ;;  %v2132_v6 = vadd.f32 %v2131_v45, %v2130_v48  ;;  %v2142_v11 = vadd.f32 %v2091_v18, %v2090_v9  ;;  %v3262_v37 = vadd.f32 %v1932_v24, %v4965_v17  ;;  %v3232_v13 = vpop.f32.mrb[14].mxu0 }
 0x238   : > { %v2140_v43 = vrot.slane %v2139_v38, 1  ;;  %v2150_v30 = vrot.slane %v2149_v27, 4  ;;  %v2064_v51 = vadd.f32 %v3261_v28, %v4973_v57  ;;  %v3263_v15 = vadd.f32 %v3232_v13, %v4967_v33  ;;  %v1935_v60 = vpop.f32.mrb[15].mxu0 }
 0x239   : > { %v2329_v50 = vsel %vm2328_vm7, %v2313_v46, %v2312_v1  ;;  %v2133_v10 = vrot.slane %v2132_v6, 1  ;;  %v2143_v53 = vrot.slane %v2142_v11, 4  ;;  %v2062_v34 = vadd.f32 %v3262_v37, %v4973_v57 }
 0x23a   : > { %v2141_v20 = vadd.f32 %v2140_v43, %v2139_v38  ;;  %v2151_v54 = vadd.f32 %v2150_v30, %v2149_v27  ;;  %v2065_v3 = vadd.f32 %v3263_v15, %v4973_v57  ;;  %v3264_v31 = vadd.f32 %v1935_v60, %v4969_v32 }
 0x23b   : > { %v2134_v59 = vadd.f32 %v2133_v10, %v2132_v6  ;;  %v2144_v25 = vadd.f32 %v2143_v53, %v2142_v11  ;;  %v2096_v4 = vmax.f32 %v2064_v51, 0.0  ;;  %v2094_v41 = vmax.f32 %v2062_v34, 0.0 }
 0x23c   : > { %v5022_v17 = vpop.f32.mrb[28].mxu1  ;;  %v2229_v21 = vpack.c.bf16 %v2141_v20, %v2141_v20  ;;  %v2152_v0 = vrot.slane %v2151_v54, 2  ;;  %v2097_v14 = vmax.f32 %v2065_v3, 0.0  ;;  %v2063_v40 = vadd.f32 %v3264_v31, %v4973_v57 }
 0x23d   : > { %v5025_v33 = vpop.f32.mrb[29].mxu1  ;;  %v2228_v61 = vpack.c.bf16 %v2134_v59, %v2134_v59  ;;  %v2145_v19 = vrot.slane %v2144_v25, 2  ;;  %v3235_v49 = vpop.f32.mrb[16].mxu0 }
 0x23e   : > { %v5027_v55 = vpop.f32.mrb[30].mxu1  ;;  %v2315_v48 = vunpack.c.l.b16 %v2229_v21  ;;  %v2153_v23 = vadd.f32 %v2152_v0, %v2151_v54  ;;  %v2163_v35 = vadd.f32 %v2097_v14, %v2096_v4  ;;  %v3265_v32 = vadd.f32 %v3235_v49, %v4975_v39  ;;  %v1948_v2 = vpop.f32.mrb[17].mxu0 }
 0x23f   : > { %v5030_v12 = vpop.f32.mrb[31].mxu1  ;;  %v2314_v56 = vunpack.c.l.b16 %v2228_v61  ;;  %v2146_v16 = vadd.f32 %v2145_v19, %v2144_v25  ;;  %v2095_v36 = vmax.f32 %v2063_v40, 0.0  ;;  %v3266_v45 = vadd.f32 %v1948_v2, %v4977_v5  ;;  %v3236_v9 = vpop.f32.mrb[18].mxu0 }
 0x240   : > { %v2154_v18 = vrot.slane %v2153_v23, 1  ;;  %v2164_v58 = vrot.slane %v2163_v35, 4  ;;  %v2068_v46 = vadd.f32 %v3265_v32, %v4973_v57  ;;  %v3267_v38 = vadd.f32 %v3236_v9, %v4980_v63  ;;  %v1951_v27 = vpop.f32.mrb[19].mxu0 }
 0x241   : > { %v2331_v28 = vsel %vm2330_vm8, %v2314_v56, %v2329_v50  ;;  %v2147_v24 = vrot.slane %v2146_v16, 1  ;;  %v2156_v1 = vadd.f32 %v2095_v36, %v2094_v41  ;;  %v2066_v37 = vadd.f32 %v3266_v45, %v4973_v57 }
 0x242   : > { %v2155_v6 = vadd.f32 %v2154_v18, %v2153_v23  ;;  %v2333_v39 = vsel %vm2332_vm9, %v2315_v48, %v2331_v28  ;;  %v2165_v11 = vadd.f32 %v2164_v58, %v2163_v35  ;;  %v2069_v43 = vadd.f32 %v3267_v38, %v4973_v57 }
 0x243   : > { %v2148_v13 = vadd.f32 %v2147_v24, %v2146_v16  ;;  %v2157_v5 = vrot.slane %v2156_v1, 4  ;;  %v2100_v51 = vmax.f32 %v2068_v46, 0.0  ;;  %v3268_v63 = vadd.f32 %v1951_v27, %v4983_v47 }
 0x244   : > { %v2166_v30 = vrot.slane %v2165_v11, 2  ;;  %v2231_v15 = vpack.c.bf16 %v2155_v6, %v2155_v6  ;;  %v2101_v10 = vmax.f32 %v2069_v43, 0.0  ;;  %v2098_v20 = vmax.f32 %v2066_v37, 0.0 }
 0x245   : > { %v2230_v60 = vpack.c.bf16 %v2148_v13, %v2148_v13  ;;  %v2158_v50 = vadd.f32 %v2157_v5, %v2156_v1  ;;  %v3239_v53 = vpop.f32.mrb[20].mxu0  ;;  %v2067_v54 = vadd.f32 %v3268_v63, %v4973_v57 }
 0x246   : > { %v2167_v34 = vadd.f32 %v2166_v30, %v2165_v11  ;;  %v3269_v3 = vadd.f32 %v3239_v53, %v4988_v22  ;;  %v1964_v59 = vpop.f32.mrb[21].mxu0  ;;  %v2177_v21 = vadd.f32 %v2101_v10, %v2100_v51  ;;  %v2317_v40 = vunpack.c.l.b16 %v2231_v15 }
 0x247   : > { %v2316_v25 = vunpack.c.l.b16 %v2230_v60  ;;  %v2159_v31 = vrot.slane %v2158_v50, 2  ;;  %v3270_v0 = vadd.f32 %v1964_v59, %v4991_v26  ;;  %v3240_v4 = vpop.f32.mrb[22].mxu0  ;;  %v2099_v14 = vmax.f32 %v2067_v54, 0.0 }
 0x248   : > { %v2168_v47 = vrot.slane %v2167_v34, 1  ;;  %v2072_v61 = vadd.f32 %v3269_v3, %v4973_v57  ;;  %v3271_v19 = vadd.f32 %v3240_v4, %v4994_v44  ;;  %v1967_v41 = vpop.f32.mrb[23].mxu0  ;;  %v2178_v23 = vrot.slane %v2177_v21, 4 }
 0x249   : > { %v2335_v49 = vsel %vm2334_vm10, %v2316_v25, %v2333_v39  ;;  %v2160_v48 = vadd.f32 %v2159_v31, %v2158_v50  ;;  %v2170_v35 = vadd.f32 %v2099_v14, %v2098_v20  ;;  %v2070_v32 = vadd.f32 %v3270_v0, %v4973_v57 }
 0x24a   : > { %v2169_v22 = vadd.f32 %v2168_v47, %v2167_v34  ;;  %v2073_v26 = vadd.f32 %v3271_v19, %v4973_v57  ;;  %v2179_v56 = vadd.f32 %v2178_v23, %v2177_v21  ;;  %v3272_v16 = vadd.f32 %v1967_v41, %v4997_v8 }
 0x24b   : > { %v2161_v2 = vrot.slane %v2160_v48, 1  ;;  %v2171_v36 = vrot.slane %v2170_v35, 4  ;;  %v2104_v44 = vmax.f32 %v2072_v61, 0.0  ;;  %v2337_v9 = vsel %vm2336_vm11, %v2317_v40, %v2335_v49 }
 0x24c   : > { %v2105_v45 = vmax.f32 %v2073_v26, 0.0  ;;  %v2233_v18 = vpack.c.bf16 %v2169_v22, %v2169_v22  ;;  %v2180_v46 = vrot.slane %v2179_v56, 2  ;;  %v2071_v38 = vadd.f32 %v3272_v16, %v4973_v57 }
 0x24d   : > { %v2162_v58 = vadd.f32 %v2161_v2, %v2160_v48  ;;  %v3243_v27 = vpop.f32.mrb[24].mxu0  ;;  %v2172_v28 = vadd.f32 %v2171_v36, %v2170_v35  ;;  %v2102_v24 = vmax.f32 %v2070_v32, 0.0 }
 0x24e   : > { %v2191_v1 = vadd.f32 %v2105_v45, %v2104_v44  ;;  %v3273_v6 = vadd.f32 %v3243_v27, %v5005_v52  ;;  %v1980_v39 = vpop.f32.mrb[25].mxu0  ;;  %v2181_v8 = vadd.f32 %v2180_v46, %v2179_v56  ;;  %v2103_v37 = vmax.f32 %v2071_v38, 0.0 }
 0x24f   : > { %v2232_v11 = vpack.c.bf16 %v2162_v58, %v2162_v58  ;;  %v3274_v13 = vadd.f32 %v1980_v39, %v5008_v7  ;;  %v3244_v5 = vpop.f32.mrb[26].mxu0  ;;  %v2173_v43 = vrot.slane %v2172_v28, 2  ;;  %v2319_v60 = vunpack.c.l.b16 %v2233_v18 }
 0x250   : > { %v2192_v30 = vrot.slane %v2191_v1, 4  ;;  %v2076_v51 = vadd.f32 %v3273_v6, %v4973_v57  ;;  %v3275_v63 = vadd.f32 %v3244_v5, %v5011_v62  ;;  %v1983_v15 = vpop.f32.mrb[27].mxu0  ;;  %v2182_v10 = vrot.slane %v2181_v8, 1 }
 0x251   : > { %v2318_v50 = vunpack.c.l.b16 %v2232_v11  ;;  %v2184_v53 = vadd.f32 %v2103_v37, %v2102_v24  ;;  %v2174_v34 = vadd.f32 %v2173_v43, %v2172_v28  ;;  %v2074_v20 = vadd.f32 %v3274_v13, %v4973_v57 }
 0x252   : > { %v2193_v52 = vadd.f32 %v2192_v30, %v2191_v1  ;;  %v2077_v54 = vadd.f32 %v3275_v63, %v4973_v57  ;;  %v2183_v3 = vadd.f32 %v2182_v10, %v2181_v8  ;;  %v2108_v59 = vmax.f32 %v2076_v51, 0.0 }
 0x253   : > { %v2185_v7 = vrot.slane %v2184_v53, 4  ;;  %v3276_v25 = vadd.f32 %v1983_v15, %v5013_v29  ;;  %v2175_v31 = vrot.slane %v2174_v34, 1  ;;  %v2339_v62 = vsel %vm2338_vm12, %v2318_v50, %v2337_v9 }
 0x254   : > { %v2194_v21 = vrot.slane %v2193_v52, 2  ;;  %v2109_v0 = vmax.f32 %v2077_v54, 0.0  ;;  %v2235_v4 = vpack.c.bf16 %v2183_v3, %v2183_v3  ;;  %v5062_v19 = vsel %vm2340_vm13, %v2319_v60, %v2339_v62 }
 0x255   : > { %v2186_v47 = vadd.f32 %v2185_v7, %v2184_v53  ;;  %v2075_v14 = vadd.f32 %v3276_v25, %v4973_v57  ;;  %v3247_v61 = vpop.f32.mrb[28].mxu0  ;;  %v2176_v41 = vadd.f32 %v2175_v31, %v2174_v34  ;;  %v2106_v22 = vmax.f32 %v2074_v20, 0.0 }
 0x256   : > { %v2195_v40 = vadd.f32 %v2194_v21, %v2193_v52  ;;  %v2205_v49 = vadd.f32 %v2109_v0, %v2108_v59  ;;  %v3277_v48 = vadd.f32 %v3247_v61, %v5022_v17  ;;  %v1996_v23 = vpop.f32.mrb[29].mxu0  ;;  %v2321_v2 = vunpack.c.l.b16 %v2235_v4 }
 0x257   : > { %v2187_v29 = vrot.slane %v2186_v47, 2  ;;  %v2107_v35 = vmax.f32 %v2075_v14, 0.0  ;;  %v3278_v32 = vadd.f32 %v1996_v23, %v5025_v33  ;;  %v3248_v26 = vpop.f32.mrb[30].mxu0  ;;  %v2234_v56 = vpack.c.bf16 %v2176_v41, %v2176_v41 }
 0x258   : > { %v2196_v16 = vrot.slane %v2195_v40, 1  ;;  %v2206_v36 = vrot.slane %v2205_v49, 4  ;;  %v1999_v44 = vpop.f32.mrb[31].mxu0  ;;  %v2080_v18 = vadd.f32 %v3277_v48, %v4973_v57  ;;  %v3279_v58 = vadd.f32 %v3248_v26, %v5027_v55 }
 0x259   : > { %v2188_v45 = vadd.f32 %v2187_v29, %v2186_v47  ;;  %v2198_v9 = vadd.f32 %v2107_v35, %v2106_v22  ;;  %v2320_v46 = vunpack.c.l.b16 %v2234_v56  ;;  %v2078_v6 = vadd.f32 %v3278_v32, %v4973_v57 }
 0x25a   : > { %v2197_v17 = vadd.f32 %v2196_v16, %v2195_v40  ;;  %v2207_v38 = vadd.f32 %v2206_v36, %v2205_v49  ;;  %v2081_v24 = vadd.f32 %v3279_v58, %v4973_v57  ;;  %v3280_v39 = vadd.f32 %v1999_v44, %v5030_v12  ;;  %v3489_v16 = vld [vmem:[%s4212_s23 + $0x8] ss:$16 sps:$4 sm:$0xff]  }
 0x25b   : > { %v2189_v27 = vrot.slane %v2188_v45, 1  ;;  %v2199_v28 = vrot.slane %v2198_v9, 4  ;;  %v2342_v33 = vsel %vm2328_vm7, %v2321_v2, %v2320_v46  ;;  %v2112_v37 = vmax.f32 %v2080_v18, 0.0  ;;  %v3497_v18 = vld [vmem:[%s4212_s23 + $0x4c] ss:$16 sps:$4 sm:$0xff]  }
 0x25c   : > { %v2208_v1 = vrot.slane %v2207_v38, 2  ;;  %v2113_v13 = vmax.f32 %v2081_v24, 0.0  ;;  %v2237_v5 = vpack.c.bf16 %v2197_v17, %v2197_v17  ;;  %v2079_v43 = vadd.f32 %v3280_v39, %v4973_v57  ;;  %v3495_v58 = vld [vmem:[%s4212_s23 + $0x48] ss:$16 sps:$4 sm:$0xff]   ;;  %v3500_v46 = vld [vmem:[%s4212_s23 + $0x6c] ss:$16 sps:$4 sm:$0xff]  }
 0x25d   : > { %v2190_v11 = vadd.f32 %v2189_v27, %v2188_v45  ;;  %v2200_v8 = vadd.f32 %v2199_v28, %v2198_v9  ;;  %v2110_v60 = vmax.f32 %v2078_v6, 0.0  ;;  %v3494_v45 = vld [vmem:[%s4212_s23 + $0x2c] ss:$16 sps:$4 sm:$0xff]   ;;  %v3492_v9 = vld [vmem:[%s4212_s23 + $0x28] ss:$16 sps:$4 sm:$0xff]   ;;  %v2276_v6 = vlaneseq }
 0x25e   : > { %v2209_v55 = vadd.f32 %v2208_v1, %v2207_v38  ;;  %v2219_v63 = vadd.f32 %v2113_v13, %v2112_v37  ;;  %v2111_v50 = vmax.f32 %v2079_v43, 0.0  ;;  %v2323_v52 = vunpack.c.l.b16 %v2237_v5  ;;  %v3503_v17 = vld [vmem:[%s4212_s23 + $0x8c] ss:$16 sps:$4 sm:$0xff]   ;;  %v3501_v38 = vld [vmem:[%s4212_s23 + $0x88] ss:$16 sps:$4 sm:$0xff]   ;;  %v2602_v13 = vpop.permute.xlu0 %2601 }
 0x25f   : > { %v2236_v30 = vpack.c.bf16 %v2190_v11, %v2190_v11  ;;  %v2201_v51 = vrot.slane %v2200_v8, 2  ;;  %v3506_v27 = vld [vmem:[%s4212_s23 + $0xac] ss:$16 sps:$4 sm:$0xff]   ;;  %v3507_v24 = vld [vmem:[%s4212_s23 + $0xc8] ss:$16 sps:$4 sm:$0xff]   ;;  %v2277_v39 = vshrl.u32 %v2276_v6, 7 }
 0x260   : > { %v2210_v15 = vrot.slane %v2209_v55, 1  ;;  %v2220_v34 = vrot.slane %v2219_v63, 4  ;;  %v2212_v12 = vadd.f32 %v2111_v50, %v2110_v60  ;;  %v3509_v28 = vld [vmem:[%s4212_s23 + $0xcc] ss:$16 sps:$4 sm:$0xff]   ;;  %v3510_v1 = vld [vmem:[%s4212_s23 + $0xe8] ss:$16 sps:$4 sm:$0xff]  }
 0x261   : > { %v2322_v10 = vunpack.c.l.b16 %v2236_v30  ;;  %v2202_v53 = vadd.f32 %v2201_v51, %v2200_v8  ;;  %v2278_v11 = vsub.s32 0, %v2277_v39  ;;  %v2274_v8 = vld [vmem:[%s4219_s1] sm:$0xf]  ;;  %v2282_v37 = vsub.s32 1, %v2277_v39 }
 0x262   : > { %v2211_v20 = vadd.f32 %v2210_v15, %v2209_v55  ;;  %v2221_v7 = vadd.f32 %v2220_v34, %v2219_v63  ;;  %v2213_v25 = vrot.slane %v2212_v12, 4  ;;  %v2607_v60 = vpop.permute.xlu0 %2606 }
 0x263   : > { %v2343_v54 = vsel %vm2330_vm8, %v2322_v10, %v2342_v33  ;;  %v2203_v3 = vrot.slane %v2202_v53, 1  ;;  %v3512_v33 = vld [vmem:[%s4212_s23 + $0xec] ss:$16 sps:$4 sm:$0xff]   ;;  %v2279_v5 = vrot.slane %v2274_v8, %v2278_v11  ;;  %v2283_v55 = vrot.slane %v2274_v8, %v2282_v37 }
 0x264   : > { %v2344_v59 = vsel %vm2332_vm9, %v2323_v52, %v2343_v54  ;;  %v2222_v31 = vrot.slane %v2221_v7, 2  ;;  %v2239_v21 = vpack.c.bf16 %v2211_v20, %v2211_v20  ;;  %v2214_v0 = vadd.f32 %v2213_v25, %v2212_v12 }
 0x265   : > { %v2204_v57 = vadd.f32 %v2203_v3, %v2202_v53  ;;  %v2286_v54 = vsub.s32 2, %v2277_v39  ;;  %v2290_v3 = vsub.s32 3, %v2277_v39 }
 0x266   : > { %v2223_v4 = vadd.f32 %v2222_v31, %v2221_v7  ;;  %v2215_v47 = vrot.slane %v2214_v0, 2  ;;  %v2325_v41 = vunpack.c.l.b16 %v2239_v21 }
 0x267   : > { %v2238_v62 = vpack.c.bf16 %v2204_v57, %v2204_v57  ;;  %v2287_v7 = vrot.slane %v2274_v8, %v2286_v54 }
 0x268   : > { %v2224_v61 = vrot.slane %v2223_v4, 1  ;;  %v2216_v40 = vadd.f32 %v2215_v47, %v2214_v0 }
 0x269   : > { %v2324_v14 = vunpack.c.l.b16 %v2238_v62 }
 0x26a   : > { %v2225_v48 = vadd.f32 %v2224_v61, %v2223_v4  ;;  %v2217_v23 = vrot.slane %v2216_v40, 1 }
 0x26b   : > { %v2345_v49 = vsel %vm2334_vm10, %v2324_v14, %v2344_v59  ;;  %v2291_v59 = vrot.slane %v2274_v8, %v2290_v3 }
 0x26c   : > { %v2346_v29 = vsel %vm2336_vm11, %v2325_v41, %v2345_v49  ;;  %v2218_v22 = vadd.f32 %v2217_v23, %v2216_v40  ;;  %v2241_v35 = vpack.c.bf16 %v2225_v48, %v2225_v48 }
 0x26e   : > { %v2240_v32 = vpack.c.bf16 %v2218_v22, %v2218_v22  ;;  %v2327_v2 = vunpack.c.l.b16 %v2241_v35 }
 0x270   : > { %v2326_v26 = vunpack.c.l.b16 %v2240_v32 }
 0x272   : > { %v2347_v56 = vsel %vm2338_vm12, %v2326_v26, %v2346_v29 }
 0x273   : > { %v2348_v36 = vsel %vm2340_vm13, %v2327_v2, %v2347_v56 }
 0x274   : > { %v2349_v44 = vpack.c.b16 %v2348_v36, %v5062_v19  ;;  %v3498_v19 = vld [vmem:[%s4212_s23 + $0x68] ss:$16 sps:$4 sm:$0xff]  }
 0x276   : > { %2544 = vmatmul.mubr.bf16.vlgmr.msra.gmra.mrb[32].mxu1 %v2349_v44 }
 0x277   : > { %2555 = vmatpush1.bf16.msra.mxu1 %v3489_v16  ;;  %2586 = vmatprep.mubr.bf16.mxu1 %v3830_v42  ;;  %v3504_v42 = vld [vmem:[%s4212_s23 + $0xa8] ss:$16 sps:$4 sm:$0xff]  }
 0x278   : > { %2556 = vmatprep.subr.bf16.mxu1 %v3494_v45 }
 0x27b   : > { %2557 = vmatpush1.bf16.msra.mxu1 %v3492_v9 }
 0x27c   : > { %2558 = vmatprep.subr.bf16.mxu1 %v3497_v18 }
 0x27f   : > { %2559 = vmatpush1.bf16.msra.mxu1 %v3495_v58 }
 0x280   : > { %2560 = vmatprep.subr.bf16.mxu1 %v3500_v46 }
 0x283   : > { %2561 = vmatpush1.bf16.msra.mxu1 %v3498_v19 }
 0x284   : > { %2562 = vmatprep.subr.bf16.mxu1 %v3503_v17 }
 0x287   : > { %2563 = vmatpush1.bf16.msra.mxu1 %v3501_v38 }
 0x288   : > { %2564 = vmatprep.subr.bf16.mxu1 %v3506_v27 }
 0x28b   : > { %2565 = vmatpush1.bf16.msra.mxu1 %v3504_v42 }
 0x28c   : > { %2566 = vmatprep.subr.bf16.mxu1 %v3509_v28 }
 0x28f   : > { %2567 = vmatpush1.bf16.msra.mxu1 %v3507_v24 }
 0x290   : > { %2568 = vmatprep.subr.bf16.mxu1 %v3512_v33 }
 0x293   : > { %2569 = vmatpush1.bf16.msra.mxu1 %v3510_v1 }
 0x296   : > { %2587 = vmatmul.mubr.bf16.vlgmr.msra.gmra.mrb[36].mxu1 %v2349_v44 }
 0x349   : > { %v2545_v43 = vpop.f32.mrb[32].mxu1 }
 0x34a   : > { %v2546_v30 = vadd.f32 %v2545_v43, %v2279_v5  ;;  %v2547_v51 = vpop.f32.mrb[33].mxu1 }
 0x34b   : > { %v2548_v63 = vadd.f32 %v2547_v51, %v2283_v55  ;;  %v2549_v15 = vpop.f32.mrb[34].mxu1 }
 0x34c   : > { %v2609_v50 = vmul.f32 %v2602_v13, %v2546_v30  ;;  %v2550_v10 = vadd.f32 %v2549_v15, %v2279_v5  ;;  %v2551_v53 = vpop.f32.mrb[35].mxu1 }
 0x34d   : > { %v2610_v34 = vmul.f32 %v2602_v13, %v2548_v63  ;;  %v2552_v52 = vadd.f32 %v2551_v53, %v2283_v55 }
 0x34e   : > { %v2613_v20 = vmul.f32 %v2607_v60, %v2550_v10  ;;  %2621 = vst [vmem:[%s5099_s30] sm:$0xff] (!%p3059_p7), %v2609_v50 }
 0x34f   : > { %v2614_v12 = vmul.f32 %v2607_v60, %v2552_v52  ;;  %2622 = vst [vmem:[%s5099_s30 + $0x8] sm:$0xff] (!%p3059_p7), %v2610_v34 }
 0x350   : > { %2625 = vst [vmem:[%s5099_s30 + $0x20] sm:$0xff] (!%p3059_p7), %v2613_v20 }
 0x351   : > { %2626 = vst [vmem:[%s5099_s30 + $0x28] sm:$0xff] (!%p3059_p7), %v2614_v12 }
 0x369   : > { %v2588_v25 = vpop.f32.mrb[36].mxu1  ;;  %2620 = sbr.rel (%p3059_p7) target bundleno = 882 (0x372), region = 80 }
 0x36a   : > { %v2589_v57 = vadd.f32 %v2588_v25, %v2287_v7  ;;  %v2590_v31 = vpop.f32.mrb[37].mxu1 }
 0x36b   : > { %v2591_v21 = vadd.f32 %v2590_v31, %v2291_v59  ;;  %v2592_v0 = vpop.f32.mrb[38].mxu1 }
 0x36c   : > { %v2611_v62 = vmul.f32 %v2602_v13, %v2589_v57  ;;  %v2593_v4 = vadd.f32 %v2592_v0, %v2287_v7  ;;  %v2594_v47 = vpop.f32.mrb[39].mxu1 }
 0x36d   : > { %v2612_v14 = vmul.f32 %v2602_v13, %v2591_v21  ;;  %v2595_v61 = vadd.f32 %v2594_v47, %v2291_v59 }
 0x36e   : > { %v2615_v41 = vmul.f32 %v2607_v60, %v2593_v4  ;;  %2623 = vst [vmem:[%s5099_s30 + $0x10] sm:$0xff] (!%p3059_p7), %v2611_v62 }
 0x36f   : > { %v2616_v40 = vmul.f32 %v2607_v60, %v2595_v61  ;;  %2624 = vst [vmem:[%s5099_s30 + $0x18] sm:$0xff] (!%p3059_p7), %v2612_v14 }
 0x370   : > { %2627 = vst [vmem:[%s5099_s30 + $0x30] sm:$0xff] %v2615_v41 }
 0x371   : > { %2628 = vst [vmem:[%s5099_s30 + $0x38] sm:$0xff] %v2616_v40 }
 0x372 PF: > { %p3060_p11 = scmp.eq.s32.totalorder %s3805_s27, 0 }
 0x373   : > { %v2633_v49 = vld [vmem:[#allocation13] sm:$0xff] (!%p3060_p11)  ;;  %v2634_v48 = vld [vmem:[#allocation13 + $0x8] sm:$0xff] (!%p3060_p11)  ;;  %v2635_v23 = vld [vmem:[#allocation13 + $0x10] sm:$0xff] (!%p3060_p11) }
 0x374   : > { %2632 = sbr.rel (%p3060_p11) target bundleno = 891 (0x37b), region = 84  ;;  %v2641_v29 = vadd.f32 (!%p3060_p11), %v2633_v49, %v2609_v50  ;;  %v2642_v22 = vadd.f32 (!%p3060_p11), %v2634_v48, %v2610_v34  ;;  %v2643_v35 = vadd.f32 (!%p3060_p11), %v2635_v23, %v2611_v62  ;;  %v2636_v32 = vld [vmem:[#allocation13 + $0x18] sm:$0xff] (!%p3060_p11)  ;;  %v2637_v26 = vld [vmem:[#allocation13 + $0x20] sm:$0xff] (!%p3060_p11)  ;;  %v2638_v2 = vld [vmem:[#allocation13 + $0x28] sm:$0xff] (!%p3060_p11) }
 0x375   : > { %v2644_v56 = vadd.f32 (!%p3060_p11), %v2636_v32, %v2612_v14  ;;  %v2645_v16 = vadd.f32 (!%p3060_p11), %v2637_v26, %v2613_v20  ;;  %v2646_v36 = vadd.f32 (!%p3060_p11), %v2638_v2, %v2614_v12  ;;  %v2639_v44 = vld [vmem:[#allocation13 + $0x30] sm:$0xff] (!%p3060_p11)  ;;  %v2640_v45 = vld [vmem:[#allocation13 + $0x38] sm:$0xff] (!%p3060_p11) }
 0x376   : > { %2649 = vst [vmem:[%s5099_s30] sm:$0xff] (!%p3060_p11), %v2641_v29  ;;  %2650 = vst [vmem:[%s5099_s30 + $0x8] sm:$0xff] (!%p3060_p11), %v2642_v22  ;;  %v2647_v9 = vadd.f32 (!%p3060_p11), %v2639_v44, %v2615_v41  ;;  %v2648_v18 = vadd.f32 (!%p3060_p11), %v2640_v45, %v2616_v40 }
 0x377   : > { %2651 = vst [vmem:[%s5099_s30 + $0x10] sm:$0xff] (!%p3060_p11), %v2643_v35  ;;  %2652 = vst [vmem:[%s5099_s30 + $0x18] sm:$0xff] (!%p3060_p11), %v2644_v56 }
 0x378   : > { %2653 = vst [vmem:[%s5099_s30 + $0x20] sm:$0xff] (!%p3060_p11), %v2645_v16  ;;  %2654 = vst [vmem:[%s5099_s30 + $0x28] sm:$0xff] (!%p3060_p11), %v2646_v36 }
 0x379   : > { %2655 = vst [vmem:[%s5099_s30 + $0x30] sm:$0xff] (!%p3060_p11), %v2647_v9  ;;  %2656 = vst [vmem:[%s5099_s30 + $0x38] sm:$0xff] (!%p3060_p11), %v2648_v18 }
 0x37b PF: > { %s5301_s11 = sld [smem:[#allocation22_spill]]  ;;  %s3068_s16 = sshll.u32 %s3805_s27, 10 }
 0x37c   : > { %s5302_s21 = sld [smem:[#allocation35_spill]]  ;;  %s2674_s9 = sshll.u32 %s5099_s30, 4  ;;  %s5126_s9 = int_to_ptr.vmem [resolvable:$true] %s2674_s9 }
 0x37d   : > { %s2658_s17 = scalar_lea.sflag [#allocation4], %s4192_s24  ;;  %s3719_s7 = scalar_lea.vmem %s5126_s9, 1024 }
 0x37e   : > { %p3720_p8 = scmp.ne.s32.totalorder %s5126_s9, %s3719_s7  ;;  %s3831_s10 = smov [#allocation14]  }
 0x37f   : > { %s3723_s12 = sshll.u32 %s3831_s10, 4  ;;  %s3724_s12 = int_to_ptr.vmem [resolvable:$false] %s3723_s12 }
 0x380   : > { %s3725_s27 = scalar_lea.vmem %s3724_s12, 2048  ;;  %p3726_p3 = scmp.lt.s32.totalorder %s5126_s9, %s3724_s12 }
 0x381   : > { %p5303_p5 = scmp.ne.s32.totalorder %s5301_s11, 0  ;;  %p3727_p1 = scmp.lt.s32.totalorder %s3725_s27, %s3719_s7 }
 0x382   : > { %s5123_s26 = scalar_lea.hbm %s5302_s21, %s3068_s16 }
 0x383   : > { %p3721_p12 = pnand %p3720_p8, %p5303_p5  ;;  %p3728_p6 = por %p3727_p1, %p3726_p3 }
 0x385   : > { %p3722_p2 = pneg %p3721_p12 }
 0x387   : > { %p3729_p13 = pnand %p3728_p6, %p3722_p2 }
 0x389   : > { %3732 = shalt.err (!%p3729_p13)
}
 0x38a   : > { %s3733_s14 = scalar_lea.hbm %s5123_s26, 1024  ;;  %s3737_s13 = scalar_lea.hbm %s5302_s21, 2048 }
 0x38b   : > { %p3734_p10 = scmp.ne.s32.totalorder %s5123_s26, %s3733_s14  ;;  %p3738_p0 = scmp.lt.u32.totalorder %s5123_s26, %s5302_s21 }
 0x38c   : > { %p3739_p7 = scmp.lt.u32.totalorder %s3737_s13, %s3733_s14  ;;  %p3741_p8 = scmp.lt.u32.totalorder %s3733_s14, %s5123_s26 }
 0x38d   : > { %p3735_p9 = pnand %p3734_p10, %p5303_p5 }
 0x38e   : > { %p3740_p11 = por %p3739_p7, %p3738_p0 }
 0x38f   : > { %p3736_p4 = pneg %p3735_p9 }
 0x390   : > { %p3742_p12 = por %p3741_p8, %p3740_p11 }
 0x392   : > { %p3743_p2 = pnand %p3742_p12, %p3736_p4 }
 0x394   : > { %3746 = shalt.err (!%p3743_p2)
}
 0x395   : > { %s3832_s23 = smov 512   ;;  %s3833_s20 = smov 32  }
 0x396   : > { %3340 = dma.vmem_to_hbm [thread:$0]  (%p5303_p5), %s5126_s9, 1024, %s5123_s26, %s2658_s17, %s3832_s23, %s3832_s23, %s3833_s20  }
 0x397 PF: > { %s5304_s1 = sld [smem:[#allocation20_spill]]  ;;  %s5305_s5 = sld [smem:[#allocation23_spill]] }
 0x398   : > { %p5307_p1 = scmp.ge.s32.totalorder %s3813_s29, 2 }
 0x39d   : > { %s2689_s30 = sand.u32 1, %s5304_s1   ;;  %p5306_p3 = scmp.ne.s32.totalorder %s5305_s5, 0 }
 0x39e   : > { %s2690_s16 = scalar_lea.sflag [#allocation4], %s2689_s30 }
 0x39f   : > { %p3366_p6 = pnand %p5307_p1, %p5306_p3 }
 0x3a1   : > { %3788 = dma.done.wait (!%p3366_p6), %s2690_s16, 1024  }
 0x3a2   : > { %3790 = vsyncadd (!%p3366_p6), %s2690_s16, 4294966272  ;;  %s30_s29 = sadd.s32 1, %s3813_s29   ;;  %s5308_s15 = sld [smem:[#allocation21_spill]] }
 0x3a3   : > { %p27_p13 = scmp.ge.s32.totalorder %s30_s29, 4   ;;  %s5309_s26 = sld [smem:[#allocation25_spill]] }
 0x3a4   : > { %s5310_s11 = sld [smem:[#allocation24_spill]]  ;;  %s5311_s24 = smov %s3797_s25 }
 0x3a5   : > { %s5313_s27 = smov %s3809_s28  ;;  %29 = sbr.rel (!%p27_p13) target bundleno = 16 (0x10), region = 161 }
 0x3a8   : > { %s5312_s25 = smov %s5308_s15 }
 0x3aa   : > { %s5314_s28 = smov %s5310_s11 }
 0x3ac   :  { %2695 = vsyncpa [#allocation3], 1 }
 0x3ad   :  { %2697 = vsyncpa [#allocation3 + $0x1], 1 }
 0x3ae   :  { %2698 = vsyncpa [#allocation6], 1 }
 0x3af   :  { %2700 = vsyncpa [#allocation6 + $0x1], 1 }
 0x3b0   :  { %2701 = vsyncpa [#allocation9], 1 }
 0x3b1   :  { %2703 = vsyncpa [#allocation9 + $0x1], 1 }
 0x3b2   :  { %2704 = vsyncpa [#allocation12], 1 }
 0x3b3   :  { %2705 = vsyncpa [#allocation4], 1 }
 0x3b4   :  { %2707 = vsyncpa [#allocation4 + $0x1], 1 }

</bundles_post_ra>
